<compile_context>
chip_gen: v6e
topology: v6e:2x2x1
jax: 0.10.0
libtpu: 0.0.40
codegen_flags: <defaults>
</compile_context>

<pallas_src>
import math
from functools import partial

import jax
import jax.numpy as jnp
from jax.experimental import pallas as pl
from jax.experimental.pallas import tpu as pltpu

PAD = 128        # lane-dense feature width (multiple of 128)
NODE_PAD = 16    # sublane padding of the node dimension (bf16 native tile)
LEVELS = 3       # depth-3 binary tree == BlockHLA16


# -------------------------- Post-order schedule -----------------------------

def _build_schedule(levels=LEVELS):
    """Post-order schedule of the HLA tree as a stack machine.

    Each step is (is_leaf, weight_idx, in1_slot, in2_slot, out_slot) over a
    small VMEM activation-slot stack.  Leaves read one slot, heads read two.
    """
    steps = []
    leaf_ctr = [0]
    head_ctr = [0]

    def emit(level, in_slot, out_slot):
        if level == 0:
            i = leaf_ctr[0]
            leaf_ctr[0] += 1
            steps.append((1, i, in_slot, 0, out_slot))
            return
        emit(level - 1, in_slot, out_slot)            # x1 -> out_slot
        emit(level - 1, out_slot, out_slot + 1)       # x2 -> out_slot + 1
        j = head_ctr[0]
        head_ctr[0] += 1
        steps.append((0, j, out_slot, out_slot + 1, out_slot))

    emit(levels, 0, 0)
    return steps


def _stream_index(steps, want_leaf):
    """Per-step block index for a weight stack: the index actually needed at
    steps that use this stack, and the nearest needed index otherwise, so the
    block index only changes when a new slab must be fetched (one DMA per
    weight slab, prefetched >=1 step ahead by the Pallas pipeline)."""
    n = len(steps)
    idx = [None] * n
    nxt = None
    for s in range(n - 1, -1, -1):
        is_leaf, widx = steps[s][0], steps[s][1]
        if bool(is_leaf) == want_leaf:
            nxt = widx
        idx[s] = nxt
    prev = 0
    for s in range(n):
        if idx[s] is None:
            idx[s] = prev
        prev = idx[s]
    return idx


def _schedule_arrays(levels=LEVELS):
    steps = _build_schedule(levels)
    is_leaf = [st[0] for st in steps]
    in1 = [st[2] for st in steps]
    in2 = [st[3] for st in steps]
    out = [st[4] for st in steps]
    lw = _stream_index(steps, want_leaf=True)
    hw = _stream_index(steps, want_leaf=False)
    n_slots = max(max(in1), max(in2), max(out)) + 1
    arrs = tuple(jnp.asarray(v, jnp.int32) for v in (lw, hw, is_leaf, in1, in2, out))
    return arrs, len(steps), n_slots


# -------------------------- Fused Pallas kernel ------------------------------

def _hla16_step_kernel(lw_ref, hw_ref, leaf_ref, in1_ref, in2_ref, outs_ref,  # SMEM schedule
                       a_ref, x_ref,
                       lc1_ref, lc2_ref, ll1_ref, ll2_ref, lb_ref,
                       hl1_ref, hl2_ref, hb_ref,
                       o_ref,
                       act_ref):
    f32 = jnp.float32
    bf16 = jnp.bfloat16

    s = pl.program_id(0)
    last = pl.num_programs(0) - 1

    # Seed the activation stack with the padded node features.
    @pl.when(s == 0)
    def _seed():
        act_ref[0] = x_ref[...]

    is_leaf = leaf_ref[s]
    o_slot = outs_ref[s]

    @pl.when(is_leaf == 1)
    def _leaf_step():
        # Block: t1 = conv1(x); t2 = conv2(t1); out = relu([t1, t2] @ Wl + b)
        a = a_ref[...]                              # (NP, NP) bf16
        x = act_ref[in1_ref[s]]                     # (NP, P)  bf16
        xw1 = jnp.dot(x, lc1_ref[...], preferred_element_type=f32).astype(bf16)
        t1 = jnp.dot(a, xw1, preferred_element_type=f32).astype(bf16)
        xw2 = jnp.dot(t1, lc2_ref[...], preferred_element_type=f32).astype(bf16)
        t2 = jnp.dot(a, xw2, preferred_element_type=f32).astype(bf16)
        # dropout(training=False) == identity
        y = (jnp.dot(t1, ll1_ref[...], preferred_element_type=f32)
             + jnp.dot(t2, ll2_ref[...], preferred_element_type=f32)
             + lb_ref[...])
        act_ref[o_slot] = jnp.maximum(y, 0.0).astype(bf16)   # downcast fused in epilogue

    @pl.when(is_leaf == 0)
    def _head_step():
        # Head: out = relu([x1, x2] @ Wl + b), concat folded into two halves.
        x1 = act_ref[in1_ref[s]]
        x2 = act_ref[in2_ref[s]]
        y = (jnp.dot(x1, hl1_ref[...], preferred_element_type=f32)
             + jnp.dot(x2, hl2_ref[...], preferred_element_type=f32)
             + hb_ref[...])
        y = jnp.maximum(y, 0.0)

        @pl.when(s != last)
        def _store_act():
            act_ref[o_slot] = y.astype(bf16)

        @pl.when(s == last)
        def _store_out():                         # final head stays f32, lane-dense
            o_ref[...] = y


def block_hla16_forward(params, x, a_hat, *, out_dim, pad_dim=PAD):
    n, in_dim = x.shape
    npad = max(NODE_PAD, ((n + NODE_PAD - 1) // NODE_PAD) * NODE_PAD)

    x_pad = jnp.zeros((npad, pad_dim), jnp.float32).at[:n, :in_dim].set(x)
    x_pad = x_pad.astype(jnp.bfloat16)
    a_pad = jnp.zeros((npad, npad), jnp.float32).at[:n, :n].set(a_hat)
    a_pad = a_pad.astype(jnp.bfloat16)

    (lw, hw, is_leaf, in1, in2, outs), n_steps, n_slots = _schedule_arrays()

    # Advisory cost hint: 16 graph convs (8 leaves x 2) and 15 linear heads.
    conv_flops = 2 * npad * pad_dim * pad_dim + 2 * npad * npad * pad_dim
    head_flops = 2 * 2 * npad * pad_dim * pad_dim
    flops = 16 * conv_flops + 15 * head_flops
    bytes_accessed = sum(int(math.prod(v.shape)) * v.dtype.itemsize
                         for v in params.values())
    bytes_accessed += int(a_pad.size) * 2 + int(x_pad.size) * 2 + npad * pad_dim * 4

    # index_maps receive (grid_idx, *scalar_prefetch_refs) positionally.
    def _const2(s, lw_r, hw_r, il_r, i1_r, i2_r, os_r):
        return (0, 0)

    def _leaf_idx(s, lw_r, hw_r, il_r, i1_r, i2_r, os_r):
        return (lw_r[s], 0, 0)

    def _head_idx(s, lw_r, hw_r, il_r, i1_r, i2_r, os_r):
        return (hw_r[s], 0, 0)

    grid_spec = pltpu.PrefetchScalarGridSpec(
        num_scalar_prefetch=6,
        grid=(n_steps,),
        in_specs=[
            pl.BlockSpec((npad, npad), _const2),                    # A_hat (resident)
            pl.BlockSpec((npad, pad_dim), _const2),                 # x     (resident)
            pl.BlockSpec((None, pad_dim, pad_dim), _leaf_idx),      # leaf conv1 slab
            pl.BlockSpec((None, pad_dim, pad_dim), _leaf_idx),      # leaf conv2 slab
            pl.BlockSpec((None, pad_dim, pad_dim), _leaf_idx),      # leaf lin half 1
            pl.BlockSpec((None, pad_dim, pad_dim), _leaf_idx),      # leaf lin half 2
            pl.BlockSpec((None, 1, pad_dim), _leaf_idx),            # leaf bias
            pl.BlockSpec((None, pad_dim, pad_dim), _head_idx),      # head lin half 1
            pl.BlockSpec((None, pad_dim, pad_dim), _head_idx),      # head lin half 2
            pl.BlockSpec((None, 1, pad_dim), _head_idx),            # head bias
        ],
        out_specs=pl.BlockSpec((npad, pad_dim), _const2),           # resident output
        scratch_shapes=[pltpu.VMEM((n_slots, npad, pad_dim), jnp.bfloat16)],
    )

    out_pad = pl.pallas_call(
        _hla16_step_kernel,
        out_shape=jax.ShapeDtypeStruct((npad, pad_dim), jnp.float32),
        grid_spec=grid_spec,
        compiler_params=pltpu.CompilerParams(
            dimension_semantics=("arbitrary",)),                    # serial chain
        cost_estimate=pl.CostEstimate(
            flops=int(flops), transcendentals=0,
            bytes_accessed=int(bytes_accessed)),
    )(lw, hw, is_leaf, in1, in2, outs,
      a_pad, x_pad,
      params["leaf_conv1"], params["leaf_conv2"],
      params["leaf_l1"], params["leaf_l2"], params["leaf_b"],
      params["head_l1"], params["head_l2"], params["head_b"])

    return out_pad[:n, :out_dim]


# -------------------------- Parameter init ----------------------------------

def _glorot(key, shape):
    stdv = math.sqrt(6.0 / (shape[-2] + shape[-1]))
    return jax.random.uniform(key, shape, jnp.float32, minval=-stdv, maxval=stdv)


def _pad_mat(w, pad_dim):
    fin, fout = w.shape
    return jnp.zeros((pad_dim, pad_dim), jnp.float32).at[:fin, :fout].set(w)


def init_hla16_params(key, in_dim, out_dim, pad_dim):
    """8 leaf Blocks + 7 tree heads, zero-padded to pad_dim lanes and stacked
    (post-order) so per-node slabs can be streamed by the grid schedule."""
    leaf_c1, leaf_c2, leaf_l1, leaf_l2, leaf_b = [], [], [], [], []
    head_l1, head_l2, head_b = [], [], []

    def init_leaf(k, fin, fout):
        k1, k2, k3 = jax.random.split(k, 3)
        leaf_c1.append(_pad_mat(_glorot(k1, (fin, fout)), pad_dim))
        leaf_c2.append(_pad_mat(_glorot(k2, (fout, fout)), pad_dim))
        lin = _glorot(k3, (2 * fout, fout))        # Linear(2*out, out), stored (in, out)
        leaf_l1.append(_pad_mat(lin[:fout], pad_dim))
        leaf_l2.append(_pad_mat(lin[fout:], pad_dim))
        leaf_b.append(jnp.zeros((1, pad_dim), jnp.float32))   # bias zero-init (spec)

    def init_level(k, fin, fout, level):           # post-order: left, right, self
        if level == 0:
            init_leaf(k, fin, fout)
            return
        k1, k2, k3 = jax.random.split(k, 3)
        init_level(k1, fin, fout, level - 1)
        init_level(k2, fout, fout, level - 1)
        lin = _glorot(k3, (2 * fout, fout))
        head_l1.append(_pad_mat(lin[:fout], pad_dim))
        head_l2.append(_pad_mat(lin[fout:], pad_dim))
        head_b.append(jnp.zeros((1, pad_dim), jnp.float32))

    init_level(key, in_dim, out_dim, LEVELS)       # level 3 = BlockHLA16

    bf16 = jnp.bfloat16
    return {
        "leaf_conv1": jnp.stack(leaf_c1).astype(bf16),   # (8, P, P)
        "leaf_conv2": jnp.stack(leaf_c2).astype(bf16),   # (8, P, P)
        "leaf_l1": jnp.stack(leaf_l1).astype(bf16),      # (8, P, P)
        "leaf_l2": jnp.stack(leaf_l2).astype(bf16),      # (8, P, P)
        "leaf_b": jnp.stack(leaf_b),                     # (8, 1, P) f32
        "head_l1": jnp.stack(head_l1).astype(bf16),      # (7, P, P)
        "head_l2": jnp.stack(head_l2).astype(bf16),      # (7, P, P)
        "head_b": jnp.stack(head_b),                     # (7, 1, P) f32
    }


# -------------------------- Pure-JAX reference ------------------------------

def block_hla16_reference(params, x, a_hat, *, out_dim, pad_dim=PAD):
    """Pure-JAX reference with the same cast points as the kernel."""
    bf16, f32 = jnp.bfloat16, jnp.float32
    n, in_dim = x.shape
    a = a_hat.astype(bf16)
    xp = jnp.zeros((n, pad_dim), f32).at[:, :in_dim].set(x).astype(bf16)

    lc1, lc2 = params["leaf_conv1"], params["leaf_conv2"]
    ll1, ll2, lb = params["leaf_l1"], params["leaf_l2"], params["leaf_b"]
    hl1, hl2, hb = params["head_l1"], params["head_l2"], params["head_b"]

    def conv(x_, w):
        xw = jnp.dot(x_, w, preferred_element_type=f32).astype(bf16)
        return jnp.dot(a, xw, preferred_element_type=f32).astype(bf16)

    def head(x1, x2, w1, w2, b):
        y = (jnp.dot(x1, w1, preferred_element_type=f32)
             + jnp.dot(x2, w2, preferred_element_type=f32) + b)
        return jnp.maximum(y, 0.0)

    ctr = {"leaf": 0, "head": 0}

    def leaf(x_):
        i = ctr["leaf"]; ctr["leaf"] += 1
        t1 = conv(x_, lc1[i])
        t2 = conv(t1, lc2[i])
        return head(t1, t2, ll1[i], ll2[i], lb[i]).astype(bf16)

    def hla(x_, level):
        if level == 0:
            return leaf(x_)
        x1 = hla(x_, level - 1)
        x2 = hla(x1, level - 1)
        j = ctr["head"]; ctr["head"] += 1
        y = head(x1, x2, hl1[j], hl2[j], hb[j])
        return y if level == LEVELS else y.astype(bf16)

    return hla(xp, LEVELS)[:, :out_dim].astype(f32)


# -------------------------- Glue: adjacency ---------------------------------

def normalized_adjacency(edge_index, num_nodes):
    src, dst = edge_index
    a = jnp.zeros((num_nodes, num_nodes), jnp.float32)
    a = a.at[dst, src].set(1.0)                          # .set dedups duplicate edges
    a = jnp.maximum(a, jnp.eye(num_nodes, dtype=jnp.float32))   # self-loops
    deg = a.sum(axis=1)
    d_inv_sqrt = 1.0 / jnp.sqrt(jnp.maximum(deg, 1.0))
    return a * d_inv_sqrt[:, None] * d_inv_sqrt[None, :]


# -------------------------- Main ---------------------------------------------

if __name__ == "__main__":
    num_nodes = 8
    in_dim = 16
    out_dim = 32

    key = jax.random.PRNGKey(0)
    k_x, k_p = jax.random.split(key)

    # Node features (N, in_dim)
    x = jax.random.normal(k_x, (num_nodes, in_dim), jnp.float32)

    # Deterministic ring graph, both directions: edge_index shape (2, 2N)
    src = jnp.arange(num_nodes, dtype=jnp.int32)
    dst = (src + 1) % num_nodes
    edge_index = jnp.concatenate(
        [jnp.stack([src, dst]), jnp.stack([dst, src])], axis=1
    )
    a_hat = normalized_adjacency(edge_index, num_nodes)

    params = init_hla16_params(k_p, in_dim, out_dim, PAD)

    fwd = jax.jit(partial(block_hla16_forward, out_dim=out_dim, pad_dim=PAD))
    out = fwd(params, x, a_hat)
    jax.block_until_ready(out)

    assert out.shape == (num_nodes, out_dim)
    assert bool(jnp.all(out >= 0.0))                      # final ReLU

    ref = block_hla16_reference(params, x, a_hat, out_dim=out_dim, pad_dim=PAD)
    jax.block_until_ready(ref)
    assert bool(jnp.allclose(out, ref, atol=5e-2, rtol=5e-2)), "mismatch vs JAX reference"

    print("KERNEL_OK")
</pallas_src>

<mosaic_0001>
module attributes {stable_mosaic.version = 11 : i64} {
  func.func @_hla16_step_kernel(%arg0: i32, %arg1: memref<15xi32, #tpu.memory_space<smem>>, %arg2: memref<15xi32, #tpu.memory_space<smem>>, %arg3: memref<15xi32, #tpu.memory_space<smem>>, %arg4: memref<15xi32, #tpu.memory_space<smem>>, %arg5: memref<15xi32, #tpu.memory_space<smem>>, %arg6: memref<15xi32, #tpu.memory_space<smem>>, %arg7: memref<16x16xbf16, #tpu.memory_space<vmem>>, %arg8: memref<16x128xbf16, #tpu.memory_space<vmem>>, %arg9: memref<1x128x128xbf16, #tpu.memory_space<vmem>>, %arg10: memref<1x128x128xbf16, #tpu.memory_space<vmem>>, %arg11: memref<1x128x128xbf16, #tpu.memory_space<vmem>>, %arg12: memref<1x128x128xbf16, #tpu.memory_space<vmem>>, %arg13: memref<1x1x128xf32, #tpu.memory_space<vmem>>, %arg14: memref<1x128x128xbf16, #tpu.memory_space<vmem>>, %arg15: memref<1x128x128xbf16, #tpu.memory_space<vmem>>, %arg16: memref<1x1x128xf32, #tpu.memory_space<vmem>>, %arg17: memref<16x128xf32, #tpu.memory_space<vmem>>, %arg18: memref<4x16x128xbf16, #tpu.memory_space<vmem>>) attributes {dimension_semantics = [#tpu.dimension_semantics<arbitrary>], iteration_bounds = array<i64: 15>, scalar_prefetch = 6 : i64, scratch_operands = 1 : i64, tpu.core_type = #tpu.core_type<tc>, window_params = [{pipeline_mode = #tpu.pipeline_mode<synchronous>, transform_indices = @transform_0, window_bounds = array<i64: 16, 16>}, {pipeline_mode = #tpu.pipeline_mode<synchronous>, transform_indices = @transform_1, window_bounds = array<i64: 16, 128>}, {transform_indices = @transform_2, window_bounds = array<i64: 1, 128, 128>}, {transform_indices = @transform_3, window_bounds = array<i64: 1, 128, 128>}, {transform_indices = @transform_4, window_bounds = array<i64: 1, 128, 128>}, {transform_indices = @transform_5, window_bounds = array<i64: 1, 128, 128>}, {transform_indices = @transform_6, window_bounds = array<i64: 1, 1, 128>}, {transform_indices = @transform_7, window_bounds = array<i64: 1, 128, 128>}, {transform_indices = @transform_8, window_bounds = array<i64: 1, 128, 128>}, {transform_indices = @transform_9, window_bounds = array<i64: 1, 1, 128>}, {pipeline_mode = #tpu.pipeline_mode<synchronous>, transform_indices = @transform_10, window_bounds = array<i64: 16, 128>}]} {
    %c0_i32 = arith.constant 0 : i32
    %0 = arith.cmpi eq, %arg0, %c0_i32 : i32
    %1 = arith.extui %0 : i1 to i32
    %c0_i32_0 = arith.constant 0 : i32
    %2 = arith.cmpi ne, %1, %c0_i32_0 : i32
    scf.if %2 {
      %c0 = arith.constant 0 : index
      %c0_4 = arith.constant 0 : index
      %13 = vector.load %arg8[%c0, %c0_4] : memref<16x128xbf16, #tpu.memory_space<vmem>>, vector<16x128xbf16>
      %c0_5 = arith.constant 0 : index
      %c0_6 = arith.constant 0 : index
      %c0_7 = arith.constant 0 : index
      %14 = vector.load %arg18[%c0_5, %c0_6, %c0_7] : memref<4x16x128xbf16, #tpu.memory_space<vmem>>, vector<1x16x128xbf16>
      %15 = vector.shape_cast %14 : vector<1x16x128xbf16> to vector<16x128xbf16>
      %16 = vector.shape_cast %13 : vector<16x128xbf16> to vector<1x16x128xbf16>
      tpu.vector_store %arg18[%c0_5, %c0_6, %c0_7], %16 {strides = array<i32>} : memref<4x16x128xbf16, #tpu.memory_space<vmem>>, vector<1x16x128xbf16>,
    } else {
    }
    %3 = arith.index_cast %arg0 : i32 to index
    %4 = memref.load %arg3[%3] : memref<15xi32, #tpu.memory_space<smem>>
    %5 = arith.index_cast %arg0 : i32 to index
    %6 = memref.load %arg6[%5] : memref<15xi32, #tpu.memory_space<smem>>
    %c1_i32 = arith.constant 1 : i32
    %7 = arith.cmpi eq, %4, %c1_i32 : i32
    %8 = arith.extui %7 : i1 to i32
    %c0_i32_1 = arith.constant 0 : i32
    %9 = arith.cmpi ne, %8, %c0_i32_1 : i32
    scf.if %9 {
      %c0 = arith.constant 0 : index
      %c0_4 = arith.constant 0 : index
      %13 = vector.load %arg7[%c0, %c0_4] : memref<16x16xbf16, #tpu.memory_space<vmem>>, vector<16x16xbf16>
      %14 = arith.index_cast %arg0 : i32 to index
      %15 = memref.load %arg4[%14] : memref<15xi32, #tpu.memory_space<smem>>
      %16 = arith.index_cast %15 : i32 to index
      %c0_5 = arith.constant 0 : index
      %c0_6 = arith.constant 0 : index
      %17 = vector.load %arg18[%16, %c0_5, %c0_6] : memref<4x16x128xbf16, #tpu.memory_space<vmem>>, vector<1x16x128xbf16>
      %18 = vector.shape_cast %17 : vector<1x16x128xbf16> to vector<16x128xbf16>
      %c0_7 = arith.constant 0 : index
      %c0_8 = arith.constant 0 : index
      %c0_9 = arith.constant 0 : index
      %19 = vector.load %arg9[%c0_7, %c0_8, %c0_9] : memref<1x128x128xbf16, #tpu.memory_space<vmem>>, vector<1x128x128xbf16>
      %20 = vector.shape_cast %19 : vector<1x128x128xbf16> to vector<128x128xbf16>
      %cst = arith.constant dense<0.000000e+00> : vector<16x128xf32>
      %21 = tpu.matmul %18, %20, %cst {dimension_numbers = #tpu.dot_dimension_numbers<[1], [0], [0], [1], [0, 0, 1, 1], [], []>} : vector<16x128xbf16>, vector<128x128xbf16>, vector<16x128xf32> -> vector<16x128xf32>
      %22 = arith.truncf %21 : vector<16x128xf32> to vector<16x128xbf16>
      %cst_10 = arith.constant dense<0.000000e+00> : vector<16x128xf32>
      %23 = tpu.matmul %13, %22, %cst_10 {dimension_numbers = #tpu.dot_dimension_numbers<[1], [0], [0], [1], [0, 0, 1, 1], [], []>} : vector<16x16xbf16>, vector<16x128xbf16>, vector<16x128xf32> -> vector<16x128xf32>
      %24 = arith.truncf %23 : vector<16x128xf32> to vector<16x128xbf16>
      %c0_11 = arith.constant 0 : index
      %c0_12 = arith.constant 0 : index
      %c0_13 = arith.constant 0 : index
      %25 = vector.load %arg10[%c0_11, %c0_12, %c0_13] : memref<1x128x128xbf16, #tpu.memory_space<vmem>>, vector<1x128x128xbf16>
      %26 = vector.shape_cast %25 : vector<1x128x128xbf16> to vector<128x128xbf16>
      %cst_14 = arith.constant dense<0.000000e+00> : vector<16x128xf32>
      %27 = tpu.matmul %24, %26, %cst_14 {dimension_numbers = #tpu.dot_dimension_numbers<[1], [0], [0], [1], [0, 0, 1, 1], [], []>} : vector<16x128xbf16>, vector<128x128xbf16>, vector<16x128xf32> -> vector<16x128xf32>
      %28 = arith.truncf %27 : vector<16x128xf32> to vector<16x128xbf16>
      %cst_15 = arith.constant dense<0.000000e+00> : vector<16x128xf32>
      %29 = tpu.matmul %13, %28, %cst_15 {dimension_numbers = #tpu.dot_dimension_numbers<[1], [0], [0], [1], [0, 0, 1, 1], [], []>} : vector<16x16xbf16>, vector<16x128xbf16>, vector<16x128xf32> -> vector<16x128xf32>
      %30 = arith.truncf %29 : vector<16x128xf32> to vector<16x128xbf16>
      %c0_16 = arith.constant 0 : index
      %c0_17 = arith.constant 0 : index
      %c0_18 = arith.constant 0 : index
      %31 = vector.load %arg11[%c0_16, %c0_17, %c0_18] : memref<1x128x128xbf16, #tpu.memory_space<vmem>>, vector<1x128x128xbf16>
      %32 = vector.shape_cast %31 : vector<1x128x128xbf16> to vector<128x128xbf16>
      %cst_19 = arith.constant dense<0.000000e+00> : vector<16x128xf32>
      %33 = tpu.matmul %24, %32, %cst_19 {dimension_numbers = #tpu.dot_dimension_numbers<[1], [0], [0], [1], [0, 0, 1, 1], [], []>} : vector<16x128xbf16>, vector<128x128xbf16>, vector<16x128xf32> -> vector<16x128xf32>
      %c0_20 = arith.constant 0 : index
      %c0_21 = arith.constant 0 : index
      %c0_22 = arith.constant 0 : index
      %34 = vector.load %arg12[%c0_20, %c0_21, %c0_22] : memref<1x128x128xbf16, #tpu.memory_space<vmem>>, vector<1x128x128xbf16>
      %35 = vector.shape_cast %34 : vector<1x128x128xbf16> to vector<128x128xbf16>
      %cst_23 = arith.constant dense<0.000000e+00> : vector<16x128xf32>
      %36 = tpu.matmul %30, %35, %cst_23 {dimension_numbers = #tpu.dot_dimension_numbers<[1], [0], [0], [1], [0, 0, 1, 1], [], []>} : vector<16x128xbf16>, vector<128x128xbf16>, vector<16x128xf32> -> vector<16x128xf32>
      %37 = arith.addf %33, %36 : vector<16x128xf32>
      %c0_24 = arith.constant 0 : index
      %c0_25 = arith.constant 0 : index
      %c0_26 = arith.constant 0 : index
      %38 = vector.load %arg13[%c0_24, %c0_25, %c0_26] : memref<1x1x128xf32, #tpu.memory_space<vmem>>, vector<1x1x128xf32>
      %39 = vector.shape_cast %38 : vector<1x1x128xf32> to vector<1x128xf32>
      %40 = vector.broadcast %39 : vector<1x128xf32> to vector<16x128xf32>
      %41 = arith.addf %37, %40 : vector<16x128xf32>
      %cst_27 = arith.constant 0.000000e+00 : f32
      %42 = vector.broadcast %cst_27 : f32 to vector<16x128xf32>
      %43 = arith.maximumf %41, %42 : vector<16x128xf32>
      %44 = arith.truncf %43 : vector<16x128xf32> to vector<16x128xbf16>
      %45 = arith.index_cast %6 : i32 to index
      %c0_28 = arith.constant 0 : index
      %c0_29 = arith.constant 0 : index
      %46 = vector.load %arg18[%45, %c0_28, %c0_29] : memref<4x16x128xbf16, #tpu.memory_space<vmem>>, vector<1x16x128xbf16>
      %47 = vector.shape_cast %46 : vector<1x16x128xbf16> to vector<16x128xbf16>
      %48 = vector.shape_cast %44 : vector<16x128xbf16> to vector<1x16x128xbf16>
      tpu.vector_store %arg18[%45, %c0_28, %c0_29], %48 {strides = array<i32>} : memref<4x16x128xbf16, #tpu.memory_space<vmem>>, vector<1x16x128xbf16>,
    } else {
    }
    %c0_i32_2 = arith.constant 0 : i32
    %10 = arith.cmpi eq, %4, %c0_i32_2 : i32
    %11 = arith.extui %10 : i1 to i32
    %c0_i32_3 = arith.constant 0 : i32
    %12 = arith.cmpi ne, %11, %c0_i32_3 : i32
    scf.if %12 {
      %13 = arith.index_cast %arg0 : i32 to index
      %14 = memref.load %arg4[%13] : memref<15xi32, #tpu.memory_space<smem>>
      %15 = arith.index_cast %14 : i32 to index
      %c0 = arith.constant 0 : index
      %c0_4 = arith.constant 0 : index
      %16 = vector.load %arg18[%15, %c0, %c0_4] : memref<4x16x128xbf16, #tpu.memory_space<vmem>>, vector<1x16x128xbf16>
      %17 = vector.shape_cast %16 : vector<1x16x128xbf16> to vector<16x128xbf16>
      %18 = arith.index_cast %arg0 : i32 to index
      %19 = memref.load %arg5[%18] : memref<15xi32, #tpu.memory_space<smem>>
      %20 = arith.index_cast %19 : i32 to index
      %c0_5 = arith.constant 0 : index
      %c0_6 = arith.constant 0 : index
      %21 = vector.load %arg18[%20, %c0_5, %c0_6] : memref<4x16x128xbf16, #tpu.memory_space<vmem>>, vector<1x16x128xbf16>
      %22 = vector.shape_cast %21 : vector<1x16x128xbf16> to vector<16x128xbf16>
      %c0_7 = arith.constant 0 : index
      %c0_8 = arith.constant 0 : index
      %c0_9 = arith.constant 0 : index
      %23 = vector.load %arg14[%c0_7, %c0_8, %c0_9] : memref<1x128x128xbf16, #tpu.memory_space<vmem>>, vector<1x128x128xbf16>
      %24 = vector.shape_cast %23 : vector<1x128x128xbf16> to vector<128x128xbf16>
      %cst = arith.constant dense<0.000000e+00> : vector<16x128xf32>
      %25 = tpu.matmul %17, %24, %cst {dimension_numbers = #tpu.dot_dimension_numbers<[1], [0], [0], [1], [0, 0, 1, 1], [], []>} : vector<16x128xbf16>, vector<128x128xbf16>, vector<16x128xf32> -> vector<16x128xf32>
      %c0_10 = arith.constant 0 : index
      %c0_11 = arith.constant 0 : index
      %c0_12 = arith.constant 0 : index
      %26 = vector.load %arg15[%c0_10, %c0_11, %c0_12] : memref<1x128x128xbf16, #tpu.memory_space<vmem>>, vector<1x128x128xbf16>
      %27 = vector.shape_cast %26 : vector<1x128x128xbf16> to vector<128x128xbf16>
      %cst_13 = arith.constant dense<0.000000e+00> : vector<16x128xf32>
      %28 = tpu.matmul %22, %27, %cst_13 {dimension_numbers = #tpu.dot_dimension_numbers<[1], [0], [0], [1], [0, 0, 1, 1], [], []>} : vector<16x128xbf16>, vector<128x128xbf16>, vector<16x128xf32> -> vector<16x128xf32>
      %29 = arith.addf %25, %28 : vector<16x128xf32>
      %c0_14 = arith.constant 0 : index
      %c0_15 = arith.constant 0 : index
      %c0_16 = arith.constant 0 : index
      %30 = vector.load %arg16[%c0_14, %c0_15, %c0_16] : memref<1x1x128xf32, #tpu.memory_space<vmem>>, vector<1x1x128xf32>
      %31 = vector.shape_cast %30 : vector<1x1x128xf32> to vector<1x128xf32>
      %32 = vector.broadcast %31 : vector<1x128xf32> to vector<16x128xf32>
      %33 = arith.addf %29, %32 : vector<16x128xf32>
      %cst_17 = arith.constant 0.000000e+00 : f32
      %34 = vector.broadcast %cst_17 : f32 to vector<16x128xf32>
      %35 = arith.maximumf %33, %34 : vector<16x128xf32>
      %c14_i32 = arith.constant 14 : i32
      %36 = arith.cmpi ne, %arg0, %c14_i32 : i32
      %37 = arith.extui %36 : i1 to i32
      %c0_i32_18 = arith.constant 0 : i32
      %38 = arith.cmpi ne, %37, %c0_i32_18 : i32
      scf.if %38 {
        %42 = arith.truncf %35 : vector<16x128xf32> to vector<16x128xbf16>
        %43 = arith.index_cast %6 : i32 to index
        %c0_21 = arith.constant 0 : index
        %c0_22 = arith.constant 0 : index
        %44 = vector.load %arg18[%43, %c0_21, %c0_22] : memref<4x16x128xbf16, #tpu.memory_space<vmem>>, vector<1x16x128xbf16>
        %45 = vector.shape_cast %44 : vector<1x16x128xbf16> to vector<16x128xbf16>
        %46 = vector.shape_cast %42 : vector<16x128xbf16> to vector<1x16x128xbf16>
        tpu.vector_store %arg18[%43, %c0_21, %c0_22], %46 {strides = array<i32>} : memref<4x16x128xbf16, #tpu.memory_space<vmem>>, vector<1x16x128xbf16>,
      } else {
      }
      %c14_i32_19 = arith.constant 14 : i32
      %39 = arith.cmpi eq, %arg0, %c14_i32_19 : i32
      %40 = arith.extui %39 : i1 to i32
      %c0_i32_20 = arith.constant 0 : i32
      %41 = arith.cmpi ne, %40, %c0_i32_20 : i32
      scf.if %41 {
        %c0_21 = arith.constant 0 : index
        %c0_22 = arith.constant 0 : index
        %42 = vector.load %arg17[%c0_21, %c0_22] : memref<16x128xf32, #tpu.memory_space<vmem>>, vector<16x128xf32>
        tpu.vector_store %arg17[%c0_21, %c0_22], %35 {strides = array<i32>} : memref<16x128xf32, #tpu.memory_space<vmem>>, vector<16x128xf32>,
      } else {
      }
    } else {
    }
    return
  }
  func.func @transform_0(%arg0: i32, %arg1: memref<15xi32, #tpu.memory_space<smem>>, %arg2: memref<15xi32, #tpu.memory_space<smem>>, %arg3: memref<15xi32, #tpu.memory_space<smem>>, %arg4: memref<15xi32, #tpu.memory_space<smem>>, %arg5: memref<15xi32, #tpu.memory_space<smem>>, %arg6: memref<15xi32, #tpu.memory_space<smem>>) -> (i32, i32) {
    %c0_i32 = arith.constant 0 : i32
    %c0_i32_0 = arith.constant 0 : i32
    %c0_i32_1 = arith.constant 0 : i32
    return %c0_i32, %c0_i32_0 : i32, i32
  }
  func.func @transform_1(%arg0: i32, %arg1: memref<15xi32, #tpu.memory_space<smem>>, %arg2: memref<15xi32, #tpu.memory_space<smem>>, %arg3: memref<15xi32, #tpu.memory_space<smem>>, %arg4: memref<15xi32, #tpu.memory_space<smem>>, %arg5: memref<15xi32, #tpu.memory_space<smem>>, %arg6: memref<15xi32, #tpu.memory_space<smem>>) -> (i32, i32) {
    %c0_i32 = arith.constant 0 : i32
    %c0_i32_0 = arith.constant 0 : i32
    %c0_i32_1 = arith.constant 0 : i32
    return %c0_i32, %c0_i32_0 : i32, i32
  }
  func.func @transform_2(%arg0: i32, %arg1: memref<15xi32, #tpu.memory_space<smem>>, %arg2: memref<15xi32, #tpu.memory_space<smem>>, %arg3: memref<15xi32, #tpu.memory_space<smem>>, %arg4: memref<15xi32, #tpu.memory_space<smem>>, %arg5: memref<15xi32, #tpu.memory_space<smem>>, %arg6: memref<15xi32, #tpu.memory_space<smem>>) -> (i32, i32, i32) {
    %0 = arith.index_cast %arg0 : i32 to index
    %1 = memref.load %arg1[%0] : memref<15xi32, #tpu.memory_space<smem>>
    %c0_i32 = arith.constant 0 : i32
    %c0_i32_0 = arith.constant 0 : i32
    %c0_i32_1 = arith.constant 0 : i32
    return %1, %c0_i32, %c0_i32_0 : i32, i32, i32
  }
  func.func @transform_3(%arg0: i32, %arg1: memref<15xi32, #tpu.memory_space<smem>>, %arg2: memref<15xi32, #tpu.memory_space<smem>>, %arg3: memref<15xi32, #tpu.memory_space<smem>>, %arg4: memref<15xi32, #tpu.memory_space<smem>>, %arg5: memref<15xi32, #tpu.memory_space<smem>>, %arg6: memref<15xi32, #tpu.memory_space<smem>>) -> (i32, i32, i32) {
    %0 = arith.index_cast %arg0 : i32 to index
    %1 = memref.load %arg1[%0] : memref<15xi32, #tpu.memory_space<smem>>
    %c0_i32 = arith.constant 0 : i32
    %c0_i32_0 = arith.constant 0 : i32
    %c0_i32_1 = arith.constant 0 : i32
    return %1, %c0_i32, %c0_i32_0 : i32, i32, i32
  }
  func.func @transform_4(%arg0: i32, %arg1: memref<15xi32, #tpu.memory_space<smem>>, %arg2: memref<15xi32, #tpu.memory_space<smem>>, %arg3: memref<15xi32, #tpu.memory_space<smem>>, %arg4: memref<15xi32, #tpu.memory_space<smem>>, %arg5: memref<15xi32, #tpu.memory_space<smem>>, %arg6: memref<15xi32, #tpu.memory_space<smem>>) -> (i32, i32, i32) {
    %0 = arith.index_cast %arg0 : i32 to index
    %1 = memref.load %arg1[%0] : memref<15xi32, #tpu.memory_space<smem>>
    %c0_i32 = arith.constant 0 : i32
    %c0_i32_0 = arith.constant 0 : i32
    %c0_i32_1 = arith.constant 0 : i32
    return %1, %c0_i32, %c0_i32_0 : i32, i32, i32
  }
  func.func @transform_5(%arg0: i32, %arg1: memref<15xi32, #tpu.memory_space<smem>>, %arg2: memref<15xi32, #tpu.memory_space<smem>>, %arg3: memref<15xi32, #tpu.memory_space<smem>>, %arg4: memref<15xi32, #tpu.memory_space<smem>>, %arg5: memref<15xi32, #tpu.memory_space<smem>>, %arg6: memref<15xi32, #tpu.memory_space<smem>>) -> (i32, i32, i32) {
    %0 = arith.index_cast %arg0 : i32 to index
    %1 = memref.load %arg1[%0] : memref<15xi32, #tpu.memory_space<smem>>
    %c0_i32 = arith.constant 0 : i32
    %c0_i32_0 = arith.constant 0 : i32
    %c0_i32_1 = arith.constant 0 : i32
    return %1, %c0_i32, %c0_i32_0 : i32, i32, i32
  }
  func.func @transform_6(%arg0: i32, %arg1: memref<15xi32, #tpu.memory_space<smem>>, %arg2: memref<15xi32, #tpu.memory_space<smem>>, %arg3: memref<15xi32, #tpu.memory_space<smem>>, %arg4: memref<15xi32, #tpu.memory_space<smem>>, %arg5: memref<15xi32, #tpu.memory_space<smem>>, %arg6: memref<15xi32, #tpu.memory_space<smem>>) -> (i32, i32, i32) {
    %0 = arith.index_cast %arg0 : i32 to index
    %1 = memref.load %arg1[%0] : memref<15xi32, #tpu.memory_space<smem>>
    %c0_i32 = arith.constant 0 : i32
    %c0_i32_0 = arith.constant 0 : i32
    %c0_i32_1 = arith.constant 0 : i32
    return %1, %c0_i32, %c0_i32_0 : i32, i32, i32
  }
  func.func @transform_7(%arg0: i32, %arg1: memref<15xi32, #tpu.memory_space<smem>>, %arg2: memref<15xi32, #tpu.memory_space<smem>>, %arg3: memref<15xi32, #tpu.memory_space<smem>>, %arg4: memref<15xi32, #tpu.memory_space<smem>>, %arg5: memref<15xi32, #tpu.memory_space<smem>>, %arg6: memref<15xi32, #tpu.memory_space<smem>>) -> (i32, i32, i32) {
    %0 = arith.index_cast %arg0 : i32 to index
    %1 = memref.load %arg2[%0] : memref<15xi32, #tpu.memory_space<smem>>
    %c0_i32 = arith.constant 0 : i32
    %c0_i32_0 = arith.constant 0 : i32
    %c0_i32_1 = arith.constant 0 : i32
    return %1, %c0_i32, %c0_i32_0 : i32, i32, i32
  }
  func.func @transform_8(%arg0: i32, %arg1: memref<15xi32, #tpu.memory_space<smem>>, %arg2: memref<15xi32, #tpu.memory_space<smem>>, %arg3: memref<15xi32, #tpu.memory_space<smem>>, %arg4: memref<15xi32, #tpu.memory_space<smem>>, %arg5: memref<15xi32, #tpu.memory_space<smem>>, %arg6: memref<15xi32, #tpu.memory_space<smem>>) -> (i32, i32, i32) {
    %0 = arith.index_cast %arg0 : i32 to index
    %1 = memref.load %arg2[%0] : memref<15xi32, #tpu.memory_space<smem>>
    %c0_i32 = arith.constant 0 : i32
    %c0_i32_0 = arith.constant 0 : i32
    %c0_i32_1 = arith.constant 0 : i32
    return %1, %c0_i32, %c0_i32_0 : i32, i32, i32
  }
  func.func @transform_9(%arg0: i32, %arg1: memref<15xi32, #tpu.memory_space<smem>>, %arg2: memref<15xi32, #tpu.memory_space<smem>>, %arg3: memref<15xi32, #tpu.memory_space<smem>>, %arg4: memref<15xi32, #tpu.memory_space<smem>>, %arg5: memref<15xi32, #tpu.memory_space<smem>>, %arg6: memref<15xi32, #tpu.memory_space<smem>>) -> (i32, i32, i32) {
    %0 = arith.index_cast %arg0 : i32 to index
    %1 = memref.load %arg2[%0] : memref<15xi32, #tpu.memory_space<smem>>
    %c0_i32 = arith.constant 0 : i32
    %c0_i32_0 = arith.constant 0 : i32
    %c0_i32_1 = arith.constant 0 : i32
    return %1, %c0_i32, %c0_i32_0 : i32, i32, i32
  }
  func.func @transform_10(%arg0: i32, %arg1: memref<15xi32, #tpu.memory_space<smem>>, %arg2: memref<15xi32, #tpu.memory_space<smem>>, %arg3: memref<15xi32, #tpu.memory_space<smem>>, %arg4: memref<15xi32, #tpu.memory_space<smem>>, %arg5: memref<15xi32, #tpu.memory_space<smem>>, %arg6: memref<15xi32, #tpu.memory_space<smem>>) -> (i32, i32) {
    %c0_i32 = arith.constant 0 : i32
    %c0_i32_0 = arith.constant 0 : i32
    %c0_i32_1 = arith.constant 0 : i32
    return %c0_i32, %c0_i32_0 : i32, i32
  }
}

</mosaic_0001>

<bundles_post_ra>
// kernel: block_hla16_forward.1
= control target key start
LH: loop header
LB: loop body
LE: loop exit
PB: predicated region body
PF: predicated region fallthrough
CT: control target
= control target key end

     0   :  { %s3639_s0 = inlined_call_operand.vmem [shape: s32[15], index: 0, kind: input, shape index: {}]   ;;  %s3640_s6 = inlined_call_operand.vmem [shape: bf16[16,16], index: 6, kind: input, shape index: {}]   ;;  %s3641_s7 = inlined_call_operand.vmem [shape: bf16[16,128], index: 7, kind: input, shape index: {}]   ;;  %s3642_s8 = inlined_call_operand.hbm [shape: bf16[8,128,128], index: 8, kind: input, shape index: {}]   ;;  %s3643_s9 = inlined_call_operand.hbm [shape: bf16[8,128,128], index: 9, kind: input, shape index: {}]   ;;  %s3644_s10 = inlined_call_operand.hbm [shape: bf16[8,128,128], index: 10, kind: input, shape index: {}]   ;;  %s3645_s11 = inlined_call_operand.hbm [shape: bf16[8,128,128], index: 11, kind: input, shape index: {}]   ;;  %s3646_s12 = inlined_call_operand.vmem [shape: f32[8,1,128], index: 12, kind: input, shape index: {}]   ;;  %s3647_s13 = inlined_call_operand.hbm [shape: bf16[7,128,128], index: 13, kind: input, shape index: {}]   ;;  %s3648_s14 = inlined_call_operand.hbm [shape: bf16[7,128,128], index: 14, kind: input, shape index: {}]   ;;  %s3649_s15 = inlined_call_operand.vmem [shape: f32[7,1,128], index: 15, kind: input, shape index: {}]   ;;  %s3650_s16 = inlined_call_operand.vmem [shape: f32[16,128], index: 16, kind: output, shape index: {}]   ;;  %s3651_s1 = inlined_call_operand.vmem [shape: s32[15], index: 1, kind: input, shape index: {}]   ;;  %s3652_s2 = inlined_call_operand.vmem [shape: s32[15], index: 2, kind: input, shape index: {}]   ;;  %s3653_s3 = inlined_call_operand.vmem [shape: s32[15], index: 3, kind: input, shape index: {}]   ;;  %s3654_s4 = inlined_call_operand.vmem [shape: s32[15], index: 4, kind: input, shape index: {}]   ;;  %s3655_s5 = inlined_call_operand.vmem [shape: s32[15], index: 5, kind: input, shape index: {}]  }
   0x1   :  { %3695 = sst [smem:[#allocation58_spill]] %s3639_s0  ;;  %s25_s26 = sshll.u32 %s3651_s1, 4  ;;  %s26_s26 = int_to_ptr.vmem [resolvable:$true] %s25_s26 }
   0x2   :  { %3696 = sst [smem:[#allocation59_spill]] %s3640_s6 }
   0x3   :  { %3697 = sst [smem:[#allocation60_spill]] %s3641_s7 }
   0x4   :  { %3698 = sst [smem:[#allocation61_spill]] %s3642_s8 }
   0x5   :  { %3699 = sst [smem:[#allocation62_spill]] %s3643_s9 }
   0x6   :  { %3700 = sst [smem:[#allocation63_spill]] %s3644_s10 }
   0x7   :  { %3701 = sst [smem:[#allocation64_spill]] %s3645_s11 }
   0x8   :  { %3702 = sst [smem:[#allocation65_spill]] %s3646_s12 }
   0x9   :  { %3703 = sst [smem:[#allocation66_spill]] %s3647_s13 }
   0xa   :  { %3704 = sst [smem:[#allocation67_spill]] %s3648_s14 }
   0xb   :  { %3705 = sst [smem:[#allocation68_spill]] %s3649_s15 }
   0xc   :  { %3706 = sst [smem:[#allocation69_spill]] %s3650_s16 }
   0xd   :  { %s3707_s23 = sld [smem:[#allocation58_spill]] }
  0x13   :  { %s21_s6 = sshll.u32 %s3707_s23, 4  ;;  %s22_s6 = int_to_ptr.vmem [resolvable:$true] %s21_s6 }
  0x14   :  { %s2265_s27 = scalar_lea.vmem %s22_s6, 16  ;;  %p2270_p1 = scmp.lt.s32.totalorder %s22_s6, %s22_s6 }
  0x15   :  { %p2266_p0 = scmp.ne.s32.totalorder %s22_s6, %s2265_s27  ;;  %p2271_p2 = scmp.lt.s32.totalorder %s2265_s27, %s2265_s27 }
  0x17   :  { %p2272_p3 = por %p2271_p2, %p2270_p1 }
  0x19   :  { %p2273_p4 = pnand %p2272_p3, %p2266_p0 }
  0x1b   :  { %2276 = shalt.err (!%p2273_p4)  }
  0x1c   :  { %s2683_s28 = smov [#allocation4]   ;;  %s2277_s29 = scalar_lea.vmem %s26_s26, 16 }
  0x1d   :  { %24 = dma.vmem_to_smem %s22_s6, 16, %s2683_s28, [#allocation3] }
  0x1e   :  { %p2278_p5 = scmp.ne.s32.totalorder %s26_s26, %s2277_s29  ;;  %p2282_p6 = scmp.lt.s32.totalorder %s26_s26, %s26_s26 }
  0x1f   :  { %p2283_p7 = scmp.lt.s32.totalorder %s2277_s29, %s2277_s29 }
  0x21   :  { %p2284_p8 = por %p2283_p7, %p2282_p6 }
  0x23   :  { %p2285_p9 = pnand %p2284_p8, %p2278_p5 }
  0x25   :  { %2288 = shalt.err (!%p2285_p9)  }
  0x26   :  { %s2684_s30 = smov [#allocation5]   ;;  %s29_s17 = sshll.u32 %s3652_s2, 4  ;;  %s30_s17 = int_to_ptr.vmem [resolvable:$true] %s29_s17 }
  0x27   :  { %28 = dma.vmem_to_smem %s26_s26, 16, %s2684_s30, [#allocation3] }
  0x28   :  { %s33_s20 = sshll.u32 %s3653_s3, 4  ;;  %s2289_s21 = scalar_lea.vmem %s30_s17, 16  ;;  %s34_s20 = int_to_ptr.vmem [resolvable:$true] %s33_s20 }
  0x29   :  { %p2290_p10 = scmp.ne.s32.totalorder %s30_s17, %s2289_s21  ;;  %p2294_p11 = scmp.lt.s32.totalorder %s30_s17, %s30_s17 }
  0x2a   :  { %p2295_p12 = scmp.lt.s32.totalorder %s2289_s21, %s2289_s21 }
  0x2c   :  { %p2296_p13 = por %p2295_p12, %p2294_p11 }
  0x2e   :  { %p2297_p0 = pnand %p2296_p13, %p2290_p10 }
  0x30   :  { %2300 = shalt.err (!%p2297_p0)  }
  0x31   :  { %s2685_s6 = smov [#allocation6]   ;;  %s2301_s22 = scalar_lea.vmem %s34_s20, 16 }
  0x32   :  { %32 = dma.vmem_to_smem %s30_s17, 16, %s2685_s6, [#allocation3] }
  0x33   :  { %p2302_p1 = scmp.ne.s32.totalorder %s34_s20, %s2301_s22  ;;  %p2306_p2 = scmp.lt.s32.totalorder %s34_s20, %s34_s20 }
  0x34   :  { %p2307_p3 = scmp.lt.s32.totalorder %s2301_s22, %s2301_s22 }
  0x36   :  { %p2308_p4 = por %p2307_p3, %p2306_p2 }
  0x38   :  { %p2309_p5 = pnand %p2308_p4, %p2302_p1 }
  0x3a   :  { %2312 = shalt.err (!%p2309_p5)  }
  0x3b   :  { %s2686_s2 = smov [#allocation7]   ;;  %s37_s24 = sshll.u32 %s3654_s4, 4  ;;  %s38_s24 = int_to_ptr.vmem [resolvable:$true] %s37_s24 }
  0x3c   :  { %36 = dma.vmem_to_smem %s34_s20, 16, %s2686_s2, [#allocation3] }
  0x3d   :  { %s41_s27 = sshll.u32 %s3655_s5, 4  ;;  %s2313_s28 = scalar_lea.vmem %s38_s24, 16  ;;  %s42_s27 = int_to_ptr.vmem [resolvable:$true] %s41_s27 }
  0x3e   :  { %p2314_p6 = scmp.ne.s32.totalorder %s38_s24, %s2313_s28  ;;  %p2318_p7 = scmp.lt.s32.totalorder %s38_s24, %s38_s24 }
  0x3f   :  { %p2319_p8 = scmp.lt.s32.totalorder %s2313_s28, %s2313_s28 }
  0x41   :  { %p2320_p9 = por %p2319_p8, %p2318_p7 }
  0x43   :  { %p2321_p10 = pnand %p2320_p9, %p2314_p6 }
  0x45   :  { %2324 = shalt.err (!%p2321_p10)  }
  0x46   :  { %s2687_s29 = smov [#allocation8]   ;;  %s2325_s30 = scalar_lea.vmem %s42_s27, 16 }
  0x47   :  { %40 = dma.vmem_to_smem %s38_s24, 16, %s2687_s29, [#allocation3] }
  0x48   :  { %p2326_p11 = scmp.ne.s32.totalorder %s42_s27, %s2325_s30  ;;  %p2330_p12 = scmp.lt.s32.totalorder %s42_s27, %s42_s27 }
  0x49   :  { %p2331_p13 = scmp.lt.s32.totalorder %s2325_s30, %s2325_s30 }
  0x4b   :  { %p2332_p0 = por %p2331_p13, %p2330_p12 }
  0x4d   :  { %p2333_p1 = pnand %p2332_p0, %p2326_p11 }
  0x4f   :  { %2336 = shalt.err (!%p2333_p1)  }
  0x50   :  { %s2688_s4 = smov [#allocation9]  }
  0x51   :  { %44 = dma.vmem_to_smem %s42_s27, 16, %s2688_s4, [#allocation3] }
  0x52   :  { %2581 = dma.done.wait [#allocation3], 96 }
  0x53   :  { %2582 = vsyncadd [#allocation3], 4294967200 }
  0x54   :  { %46 = sfence }
  0x55   :  { %47 = vsyncpa [#allocation11], 0 }
  0x56   :  { %49 = vsyncpa [#allocation11 + $0x1], 0 }
  0x57   :  { %50 = vsyncpa [#allocation13], 0 }
  0x58   :  { %52 = vsyncpa [#allocation13 + $0x1], 0 }
  0x59   :  { %53 = vsyncpa [#allocation16], 0 }
  0x5a   :  { %55 = vsyncpa [#allocation16 + $0x1], 0 }
  0x5b   :  { %56 = vsyncpa [#allocation19], 0 }
  0x5c   :  { %58 = vsyncpa [#allocation19 + $0x1], 0  ;;  %s2804_s5 = smov 0   ;;  %s2806_s1 = smov 0  }
  0x5d   :  { %s2808_s0 = smov 0   ;;  %s2810_s17 = smov 0  }
  0x5e   :  { %s2812_s18 = smov 0   ;;  %s2814_s19 = smov 0  }
  0x5f   :  { %s2816_s20 = smov 0   ;;  %s2818_s21 = smov 0  }
  0x60   :  { %s2820_s6 = smov 0   ;;  %s2822_s22 = smov 0  }
  0x61   :  { %s2824_s2 = smov 0   ;;  %s2826_s3 = smov 0  }
  0x62   :  { %s2828_s23 = smov 0   ;;  %s2830_s24 = smov 0  }
  0x63   :  { %s2832_s25 = smov 0   ;;  %s2834_s26 = smov 0  }
  0x64   :  { %s2836_s27 = smov 0   ;;  %s2838_s28 = smov 0  }
  0x65   :  { %s2840_s29 = smov 0  }
  0x66 LB: > { %3708 = sst [smem:[#allocation39_spill]] %s2609_s5  ;;  %s2898_s30 = sadd.s32 4294967295, %s2681_s29   ;;  %s2681_s29 = sphi %s2840_s29, %s3815_s29   ;;  %s2677_s28 = sphi %s2838_s28, %s3828_s28   ;;  %s2673_s27 = sphi %s2836_s27, %s3839_s27   ;;  %s2669_s26 = sphi %s2834_s26, %s3838_s26   ;;  %s2665_s25 = sphi %s2832_s25, %s3837_s25   ;;  %s2661_s24 = sphi %s2830_s24, %s3825_s24   ;;  %s2657_s23 = sphi %s2828_s23, %s3824_s23   ;;  %s2653_s3 = sphi %s2826_s3, %s3823_s3   ;;  %s2649_s2 = sphi %s2824_s2, %s3836_s2   ;;  %s2645_s22 = sphi %s2822_s22, %s3835_s22   ;;  %s2641_s6 = sphi %s2820_s6, %s3821_s6   ;;  %s2637_s21 = sphi %s2818_s21, %s3834_s21   ;;  %s2633_s20 = sphi %s2816_s20, %s3833_s20   ;;  %s2629_s19 = sphi %s2814_s19, %s3819_s19   ;;  %s2625_s18 = sphi %s2812_s18, %s3832_s18   ;;  %s2621_s17 = sphi %s2810_s17, %s3830_s17   ;;  %s2617_s0 = sphi %s2808_s0, %s3829_s0   ;;  %s2613_s1 = sphi %s2806_s1, %s3817_s1   ;;  %s2609_s5 = sphi %s2804_s5, %s3816_s5  }
  0x67   : > { %3709 = sst [smem:[#allocation40_spill]] %s2613_s1  ;;  %s2901_s4 = sadd.s32 1, %s2681_s29  }
  0x68   : > { %3710 = sst [smem:[#allocation41_spill]] %s2617_s0  ;;  %p3672_p2 = scmp.eq.s32.totalorder %s2681_s29, 0 }
  0x69   : > { %3711 = sst [smem:[#allocation42_spill]] %s2621_s17  ;;  %p3669_p3 = scmp.eq.s32.totalorder %s2898_s30, 0 }
  0x6a   : > { %3712 = sst [smem:[#allocation43_spill]] %s2629_s19  ;;  %s143_s7 = sadd.s32 1, %s2665_s25 }
  0x6b   : > { %3713 = sst [smem:[#allocation44_spill]] %s2641_s6  ;;  %p150_p4 = scmp.ne.s32.totalorder %s2665_s25, %s2661_s24 }
  0x6c   : > { %3714 = sst [smem:[#allocation45_spill]] %s2653_s3  ;;  %p156_p5 = scmp.ne.s32.totalorder %s2661_s24, %s2657_s23 }
  0x6d   : > { %3715 = sst [smem:[#allocation46_spill]] %s2661_s24  ;;  %p2913_p6 = por %p150_p4, %p3672_p2 }
  0x6e   : > { %3716 = sst [smem:[#allocation47_spill]] %s2665_s25  ;;  %p3668_p7 = scmp.lt.s32.totalorder %s2681_s29, 15 }
  0x6f   : > { %3717 = sst [smem:[#allocation48_spill]] %s2677_s28  ;;  %p2920_p8 = por %p156_p5, %p3669_p3 }
  0x70   : > { %3718 = sst [smem:[#allocation49_spill]] %s2901_s4  ;;  %s399_s5 = sand.u32 1, %s2665_s25  }
  0x71   : > { %s138_s16 = sld [smem:[#allocation4 + %s2681_s29]]  ;;  %s1679_s24 = sshll.u32 %s399_s5, 6 }
  0x72   : > { %s139_s15 = sld [smem:[#allocation4 + %s2901_s4]]  ;;  %p2942_p10 = pnand %p3668_p7, %p2913_p6 }
  0x73   : > { %s3720_s14 = scalar_select %p2920_p8, 1, 0 }
  0x74   : > { %s1996_s0 = scalar_select %p2913_p6, [#allocation4], [#allocation21] }
  0x75   : > { %3721 = sst [smem:[#allocation50_spill]] %s3720_s14  ;;  %s401_s14 = scalar_lea.vmem [#allocation12], %s1679_s24 }
  0x76   : > { %s1997_s10 = scalar_select %p2913_p6, %s2681_s29, 0 }
  0x77   : > { %s3841_s0 = smov (!%p3668_p7, %s1996_s0), [#allocation27]  ;;  %s409_s13 = sshll.u32 %s401_s14, 4  ;;  %s2946_s13 = int_to_ptr.vmem [resolvable:$true] %s409_s13 }
  0x78   : > { %s140_s23 = ssub.s32 %s138_s16, %s139_s15  ;;  %s3843_s10 = smov (!%p3668_p7, %s1997_s10), 0 }
  0x79   : > { %p141_p9 = scmp.eq.s32.totalorder %s140_s23, 0  ;;  %s402_s16 = sld [smem:[%s3841_s0 + %s3843_s10]] }
  0x7a   : > { %p1694_p11 = scmp.ge.s32.totalorder %s2681_s29, 1  ;;  %p521_p12 = scmp.lt.s32.totalorder %s2681_s29, 16 }
  0x7b   : > { %s2929_s1 = scalar_select %p141_p9, %s2665_s25, %s143_s7  }
  0x7c   : > { %p2950_p13 = pnand %p1694_p11, %p521_p12  ;;  %s2955_s23 = sld [smem:[#allocation4 + %s2681_s29]] }
  0x7d   : > { %3722 = sst [smem:[#allocation51_spill]] %s2929_s1  ;;  %s3727_s0 = sand.u32 1, %s2681_s29  }
  0x7e   : > { %s3724_s7 = scalar_select %p2950_p13, 1, 0 }
  0x7f   : > { %s1779_s5 = sshll.u32 %s402_s16, 10  ;;  %s3726_s9 = sld [smem:[#allocation62_spill]] }
  0x80   : > { %3725 = sst [smem:[#allocation52_spill]] %s3724_s7  ;;  %s2967_s1 = scalar_lea.sflag [#allocation13], %s3727_s0 }
  0x81   : > { %s2963_s10 = sld [smem:[#allocation4 + %s2901_s4]]  ;;  %p2339_p1 = pneg %p2942_p10 }
  0x85   : > { %s2960_s24 = scalar_lea.hbm %s3726_s9, %s1779_s5  ;;  %s2342_s14 = scalar_lea.hbm %s3726_s9, 8192 }
  0x86   : > { %s2337_s25 = scalar_lea.hbm %s2960_s24, 1024  ;;  %p2343_p6 = scmp.lt.s32.totalorder %s2960_s24, %s3726_s9 }
  0x87   : > { %p2338_p0 = scmp.ne.s32.totalorder %s2960_s24, %s2337_s25  ;;  %p2344_p9 = scmp.lt.s32.totalorder %s2342_s14, %s2337_s25 }
  0x89   : > { %p2340_p4 = pnand %p2339_p1, %p2338_p0  ;;  %p2345_p11 = por %p2344_p9, %p2343_p6 }
  0x8b   : > { %p2341_p5 = pneg %p2340_p4 }
  0x8d   : > { %p2346_p12 = pnand %p2345_p11, %p2341_p5 }
  0x8f   : > { %2349 = shalt.err (!%p2346_p12)
}
  0x90   : > { %s2350_s0 = scalar_lea.vmem %s2946_s13, 1024  ;;  %s2689_s17 = smov [#allocation12]  }
  0x91   : > { %p2351_p7 = scmp.ne.s32.totalorder %s2946_s13, %s2350_s0  ;;  %s2355_s19 = sshll.u32 %s2689_s17, 4  ;;  %s2356_s19 = int_to_ptr.vmem [resolvable:$false] %s2355_s19 }
  0x92   : > { %s2357_s7 = scalar_lea.vmem %s2356_s19, 2048  ;;  %p2358_p4 = scmp.lt.s32.totalorder %s2946_s13, %s2356_s19 }
  0x93   : > { %p2353_p3 = pnand %p2351_p7, %p2339_p1  ;;  %p2359_p2 = scmp.lt.s32.totalorder %s2357_s7, %s2350_s0 }
  0x95   : > { %p2354_p0 = pneg %p2353_p3  ;;  %p2360_p8 = por %p2359_p2, %p2358_p4 }
  0x97   : > { %p2361_p13 = pnand %p2360_p8, %p2354_p0 }
  0x99   : > { %2364 = shalt.err (!%p2361_p13)
}
  0x9a   : > { %s3674_s25 = smov 64   ;;  %s3676_s17 = smov 4  }
  0x9b   : > { %2027 = dma.hbm_to_vmem [thread:$0]  (!%p2942_p10), %s2960_s24, 1024, %s2946_s13, %s2967_s1, %s3674_s25, %s3674_s25, %s3676_s17  }
  0x9c   : > { %p206_p2 = scmp.ne.s32.totalorder %s2641_s6, %s2637_s21  ;;  %s199_s19 = sadd.s32 1, %s2641_s6 }
  0x9d   : > { %p212_p3 = scmp.ne.s32.totalorder %s2637_s21, %s2633_s20  ;;  %p3728_p7 = scmp.eq.s32.totalorder %s2681_s29, 0 }
  0x9e   : > { %s443_s14 = sand.u32 1, %s2641_s6   ;;  %p3730_p13 = scmp.eq.s32.totalorder %s2898_s30, 0 }
  0x9f   : > { %p2998_p8 = por %p206_p2, %p3728_p7  ;;  %s1685_s13 = sshll.u32 %s443_s14, 6 }
  0xa0   : > { %p3005_p1 = por %p212_p3, %p3730_p13  ;;  %s196_s20 = ssub.s32 %s2955_s23, %s2963_s10 }
  0xa1   : > { %p197_p10 = scmp.eq.s32.totalorder %s196_s20, 0  ;;  %p3734_p5 = scmp.lt.s32.totalorder %s2681_s29, 15 }
  0xa2   : > { %s3731_s15 = scalar_select %p3005_p1, 1, 0 }
  0xa3   : > { %s2002_s24 = scalar_select %p2998_p8, [#allocation4], [#allocation23] }
  0xa4   : > { %3732 = sst [smem:[#allocation53_spill]] %s3731_s15  ;;  %p3735_p6 = pmov %p3734_p5 }
  0xa5   : > { %s3014_s5 = scalar_select %p197_p10, %s2641_s6, %s199_s19  }
  0xa6   : > { %s2003_s12 = scalar_select %p2998_p8, %s2681_s29, 0 }
  0xa7   : > { %3733 = sst [smem:[#allocation54_spill]] %s3014_s5  ;;  %s3845_s24 = smov (!%p3734_p5, %s2002_s24), [#allocation29] }
  0xa8   : > { %s3847_s12 = smov (!%p3735_p6, %s2003_s12), 0  ;;  %s445_s0 = scalar_lea.vmem [#allocation15], %s1685_s13 }
  0xa9   : > { %s453_s7 = sshll.u32 %s445_s0, 4  ;;  %p3736_p9 = pmov %p3734_p5  ;;  %s3031_s7 = int_to_ptr.vmem [resolvable:$true] %s453_s7 }
  0xaa   : > { %s446_s10 = sld [smem:[%s3845_s24 + %s3847_s12]]  ;;  %p122_p12 = scmp.ne.s32.totalorder %s2677_s28, %s2673_s27 }
  0xab   : > { %p3027_p11 = pnand %p3736_p9, %p2998_p8  ;;  %s3034_s19 = sld [smem:[#allocation4 + %s2681_s29]] }
  0xac   : > { %s3037_s14 = sld [smem:[#allocation4 + %s2901_s4]]  ;;  %p3739_p4 = pmov %p3728_p7 }
  0xad   : > { %s3738_s11 = sld [smem:[#allocation64_spill]]  ;;  %s3741_s12 = sand.u32 1, %s2681_s29  }
  0xae   : > { %p3050_p2 = por %p3739_p4, %p122_p12  ;;  %s3056_s0 = scalar_lea.sflag [#allocation16], %s3741_s12 }
  0xaf   : > { %p2367_p7 = pneg %p3027_p11 }
  0xb0   : > { %s1781_s20 = sshll.u32 %s446_s10, 10 }
  0xb1   : > { %s3740_s24 = scalar_select %p3050_p2, 1, 0 }
  0xb3   : > { %s3046_s16 = scalar_lea.hbm %s3738_s11, %s1781_s20  ;;  %s2370_s20 = scalar_lea.hbm %s3738_s11, 8192 }
  0xb4   : > { %s2365_s17 = scalar_lea.hbm %s3046_s16, 1024  ;;  %p2371_p10 = scmp.lt.s32.totalorder %s3046_s16, %s3738_s11 }
  0xb5   : > { %p2366_p3 = scmp.ne.s32.totalorder %s3046_s16, %s2365_s17  ;;  %p2372_p5 = scmp.lt.s32.totalorder %s2370_s20, %s2365_s17 }
  0xb7   : > { %p2368_p8 = pnand %p2367_p7, %p2366_p3  ;;  %p2373_p6 = por %p2372_p5, %p2371_p10 }
  0xb9   : > { %p2369_p13 = pneg %p2368_p8 }
  0xbb   : > { %p2374_p9 = pnand %p2373_p6, %p2369_p13 }
  0xbd   : > { %2377 = shalt.err (!%p2374_p9)
}
  0xbe   : > { %s2378_s12 = scalar_lea.vmem %s3031_s7, 1024  ;;  %s2692_s5 = smov [#allocation15]  }
  0xbf   : > { %p2379_p12 = scmp.ne.s32.totalorder %s3031_s7, %s2378_s12  ;;  %s2383_s6 = sshll.u32 %s2692_s5, 4  ;;  %s2384_s6 = int_to_ptr.vmem [resolvable:$false] %s2383_s6 }
  0xc0   : > { %s2385_s25 = scalar_lea.vmem %s2384_s6, 2048  ;;  %p2386_p8 = scmp.lt.s32.totalorder %s3031_s7, %s2384_s6 }
  0xc1   : > { %p2381_p4 = pnand %p2379_p12, %p2367_p7  ;;  %p2387_p0 = scmp.lt.s32.totalorder %s2385_s25, %s2378_s12 }
  0xc3   : > { %p2382_p3 = pneg %p2381_p4  ;;  %p2388_p1 = por %p2387_p0, %p2386_p8 }
  0xc5   : > { %p2389_p2 = pnand %p2388_p1, %p2382_p3 }
  0xc7   : > { %2392 = shalt.err (!%p2389_p2)
}
  0xc8   : > { %s3742_s9 = smov 4   ;;  %s3743_s17 = smov 64  }
  0xc9   : > { %2037 = dma.hbm_to_vmem [thread:$0]  (!%p3027_p11), %s3046_s16, 1024, %s3031_s7, %s3056_s0, %s3743_s17, %s3743_s17, %s3742_s9  }
  0xca   : > { %p3744_p1 = scmp.ne.s32.totalorder %s2673_s27, %s2669_s26  ;;  %p3745_p0 = scmp.eq.s32.totalorder %s2898_s30, 0 }
  0xcb   : > { %s375_s5 = sand.u32 1, %s2677_s28   ;;  %s115_s23 = sadd.s32 1, %s2677_s28 }
  0xcc   : > { %p3085_p2 = por %p3745_p0, %p3744_p1  ;;  %s1676_s10 = sshll.u32 %s375_s5, 6 }
  0xcd   : > { %s112_s20 = ssub.s32 %s3034_s19, %s3037_s14  ;;  %p3747_p13 = scmp.ne.s32.totalorder %s3740_s24, 0 }
  0xce   : > { %s3746_s6 = scalar_select %p3085_p2, 1, 0 }
  0xcf   : > { %p113_p7 = scmp.eq.s32.totalorder %s112_s20, 0  ;;  %p3749_p11 = scmp.lt.s32.totalorder %s2681_s29, 15 }
  0xd0   : > { %s1993_s13 = scalar_select %p3747_p13, [#allocation4], [#allocation20] }
  0xd1   : > { %s3096_s26 = scalar_select %p113_p7, %s2677_s28, %s115_s23  }
  0xd2   : > { %s1994_s7 = scalar_select %p3747_p13, %s2681_s29, 0 }
  0xd3   : > { %3748 = sst [smem:[#allocation55_spill]] %s3096_s26  ;;  %s3849_s13 = smov (!%p3749_p11, %s1993_s13), [#allocation26] }
  0xd4   : > { %p3750_p10 = pmov %p3749_p11  ;;  %s379_s16 = scalar_lea.vmem [#allocation10], %s1676_s10 }
  0xd5   : > { %s387_s12 = sshll.u32 %s379_s16, 4  ;;  %s3116_s25 = sld [smem:[#allocation4 + %s2681_s29]]  ;;  %s3113_s12 = int_to_ptr.vmem [resolvable:$true] %s387_s12 }
  0xd6   : > { %s3851_s7 = smov (!%p3750_p10, %s1994_s7), 0  ;;  %p3751_p5 = pmov %p3750_p10 }
  0xd7   : > { %s380_s14 = sld [smem:[%s3849_s13 + %s3851_s7]]  ;;  %p178_p9 = scmp.ne.s32.totalorder %s2653_s3, %s2649_s2 }
  0xd8   : > { %p3109_p6 = pnand %p3751_p5, %p3747_p13  ;;  %s3119_s23 = sld [smem:[#allocation4 + %s2901_s4]] }
  0xd9   : > { %s3753_s8 = sld [smem:[#allocation61_spill]]  ;;  %p3754_p4 = scmp.eq.s32.totalorder %s2681_s29, 0 }
  0xda   : > { %s3136_s7 = scalar_lea.sflag [#allocation11], %s375_s5  ;;  %p2395_p1 = pneg %p3109_p6 }
  0xdb   : > { %p3132_p3 = por %p178_p9, %p3754_p4 }
  0xdd   : > { %s1778_s20 = sshll.u32 %s380_s14, 10 }
  0xde   : > { %s3755_s13 = scalar_select %p3132_p3, 1, 0 }
  0xdf   : > { %s3128_s24 = scalar_lea.hbm %s3753_s8, %s1778_s20  ;;  %s2398_s20 = scalar_lea.hbm %s3753_s8, 8192 }
  0xe0   : > { %s2393_s16 = scalar_lea.hbm %s3128_s24, 1024  ;;  %p2399_p13 = scmp.lt.s32.totalorder %s3128_s24, %s3753_s8 }
  0xe1   : > { %p2394_p8 = scmp.ne.s32.totalorder %s3128_s24, %s2393_s16  ;;  %p2400_p11 = scmp.lt.s32.totalorder %s2398_s20, %s2393_s16 }
  0xe3   : > { %p2396_p0 = pnand %p2395_p1, %p2394_p8  ;;  %p2401_p10 = por %p2400_p11, %p2399_p13 }
  0xe5   : > { %p2397_p7 = pneg %p2396_p0 }
  0xe7   : > { %p2402_p5 = pnand %p2401_p10, %p2397_p7 }
  0xe9   : > { %2405 = shalt.err (!%p2402_p5)
}
  0xea   : > { %s2406_s5 = scalar_lea.vmem %s3113_s12, 1024  ;;  %s2693_s28 = smov [#allocation10]  }
  0xeb   : > { %p2407_p9 = scmp.ne.s32.totalorder %s3113_s12, %s2406_s5  ;;  %s2411_s15 = sshll.u32 %s2693_s28, 4  ;;  %s2412_s15 = int_to_ptr.vmem [resolvable:$false] %s2411_s15 }
  0xec   : > { %s2413_s14 = scalar_lea.vmem %s2412_s15, 2048  ;;  %p2414_p0 = scmp.lt.s32.totalorder %s3113_s12, %s2412_s15 }
  0xed   : > { %p2409_p4 = pnand %p2407_p9, %p2395_p1  ;;  %p2415_p12 = scmp.lt.s32.totalorder %s2413_s14, %s2406_s5 }
  0xef   : > { %p2410_p8 = pneg %p2409_p4  ;;  %p2416_p2 = por %p2415_p12, %p2414_p0 }
  0xf1   : > { %p2417_p3 = pnand %p2416_p2, %p2410_p8 }
  0xf3   : > { %2420 = shalt.err (!%p2417_p3)
}
  0xf4   : > { %2022 = dma.hbm_to_vmem [thread:$0]  (!%p3109_p6), %s3128_s24, 1024, %s3113_s12, %s3136_s7, %s3743_s17, %s3743_s17, %s3742_s9  }
  0xf5   : > { %p3756_p2 = scmp.eq.s32.totalorder %s2898_s30, 0  ;;  %p3757_p12 = scmp.ne.s32.totalorder %s2649_s2, %s2645_s22 }
  0xf6   : > { %s421_s15 = sand.u32 1, %s2653_s3   ;;  %s171_s26 = sadd.s32 1, %s2653_s3 }
  0xf7   : > { %p3165_p3 = por %p3757_p12, %p3756_p2  ;;  %s3759_s19 = sld [smem:[#allocation43_spill]] }
  0xf8   : > { %s1682_s16 = sshll.u32 %s421_s15, 6  ;;  %s3760_s11 = sld [smem:[#allocation42_spill]] }
  0xf9   : > { %s3758_s28 = scalar_select %p3165_p3, 1, 0 }
  0xfa   : > { %s168_s20 = ssub.s32 %s3116_s25, %s3119_s23  ;;  %p3761_p1 = scmp.ne.s32.totalorder %s3755_s13, 0 }
  0xfb   : > { %p3762_p7 = scmp.lt.s32.totalorder %s2681_s29, 15  ;;  %p169_p6 = scmp.eq.s32.totalorder %s168_s20, 0 }
  0xfc   : > { %s1999_s22 = scalar_select %p3761_p1, [#allocation4], [#allocation22] }
  0xfd   : > { %p3177_p13 = pnand %p3762_p7, %p3761_p1  ;;  %p3765_p11 = pmov %p3762_p7 }
  0xfe   : > { %s3184_s24 = scalar_select %p169_p6, %s2653_s3, %s171_s26  }
  0xff   : > { %s2000_s7 = scalar_select %p3761_p1, %s2681_s29, 0 }
 0x100   : > { %3764 = sst [smem:[#allocation56_spill]] %s3184_s24  ;;  %s3853_s22 = smov (!%p3765_p11, %s1999_s22), [#allocation28] }
 0x101   : > { %p3766_p10 = pmov %p3762_p7  ;;  %s423_s25 = scalar_lea.vmem [#allocation14], %s1682_s16 }
 0x102   : > { %s431_s23 = sshll.u32 %s423_s25, 4  ;;  %s3194_s5 = sld [smem:[#allocation5 + %s2681_s29]]  ;;  %s3196_s23 = int_to_ptr.vmem [resolvable:$true] %s431_s23 }
 0x103   : > { %s3855_s7 = smov (!%p3766_p10, %s2000_s7), 0  ;;  %s3199_s14 = sld [smem:[#allocation5 + %s2901_s4]] }
 0x104   : > { %s424_s10 = sld [smem:[%s3853_s22 + %s3855_s7]]  ;;  %p262_p5 = scmp.ne.s32.totalorder %s3759_s19, %s2625_s18 }
 0x105   : > { %s3767_s8 = sld [smem:[#allocation63_spill]]  ;;  %p3768_p4 = scmp.eq.s32.totalorder %s2681_s29, 0 }
 0x106   : > { %p2423_p2 = pneg %p3177_p13 }
 0x107   : > { %p3213_p8 = por %p262_p5, %p3768_p4 }
 0x109   : > { %s3769_s16 = scalar_select %p3213_p8, 1, 0 }
 0x10a   : > { %s1780_s15 = sshll.u32 %s424_s10, 10 }
 0x10b   : > { %s3209_s24 = scalar_lea.hbm %s3767_s8, %s1780_s15  ;;  %s2426_s10 = scalar_lea.hbm %s3767_s8, 8192 }
 0x10c   : > { %s2421_s22 = scalar_lea.hbm %s3209_s24, 1024  ;;  %p2427_p7 = scmp.lt.s32.totalorder %s3209_s24, %s3767_s8 }
 0x10d   : > { %p2422_p0 = scmp.ne.s32.totalorder %s3209_s24, %s2421_s22  ;;  %p2428_p6 = scmp.lt.s32.totalorder %s2426_s10, %s2421_s22 }
 0x10f   : > { %p2424_p12 = pnand %p2423_p2, %p2422_p0  ;;  %p2429_p11 = por %p2428_p6, %p2427_p7 }
 0x111   : > { %p2425_p1 = pneg %p2424_p12 }
 0x113   : > { %p2430_p10 = pnand %p2429_p11, %p2425_p1 }
 0x115   : > { %2433 = shalt.err (!%p2430_p10)
}
 0x116   : > { %s2434_s20 = scalar_lea.vmem %s3196_s23, 1024  ;;  %s2694_s26 = smov [#allocation14]  }
 0x117   : > { %p2435_p5 = scmp.ne.s32.totalorder %s3196_s23, %s2434_s20  ;;  %s2439_s3 = sshll.u32 %s2694_s26, 4  ;;  %s2440_s3 = int_to_ptr.vmem [resolvable:$false] %s2439_s3 }
 0x118   : > { %s2441_s7 = scalar_lea.vmem %s2440_s3, 2048  ;;  %p2442_p12 = scmp.lt.s32.totalorder %s3196_s23, %s2440_s3 }
 0x119   : > { %p2437_p4 = pnand %p2435_p5, %p2423_p2  ;;  %p2443_p9 = scmp.lt.s32.totalorder %s2441_s7, %s2434_s20 }
 0x11b   : > { %p2438_p0 = pneg %p2437_p4  ;;  %p2444_p3 = por %p2443_p9, %p2442_p12 }
 0x11d   : > { %p2445_p8 = pnand %p2444_p3, %p2438_p0 }
 0x11f   : > { %2448 = shalt.err (!%p2445_p8)
}
 0x120   : > { %2032 = dma.hbm_to_vmem [thread:$0]  (!%p3177_p13), %s3209_s24, 1024, %s3196_s23, %s2967_s1, %s3743_s17, %s3743_s17, %s3742_s9  }
 0x121   : > { %p3770_p3 = scmp.eq.s32.totalorder %s2898_s30, 0  ;;  %p3771_p9 = scmp.ne.s32.totalorder %s2625_s18, %s3760_s11 }
 0x122   : > { %s3773_s12 = sand.u32 1, %s3759_s19   ;;  %s3774_s22 = sld [smem:[#allocation40_spill]] }
 0x123   : > { %p3244_p8 = por %p3771_p9, %p3770_p3  ;;  %s1688_s26 = sshll.u32 %s3773_s12, 6 }
 0x124   : > { %s3775_s25 = sld [smem:[#allocation41_spill]]  ;;  %s252_s10 = ssub.s32 %s3194_s5, %s3199_s14 }
 0x125   : > { %s3772_s3 = scalar_select %p3244_p8, 1, 0 }
 0x126   : > { %s255_s15 = sadd.s32 1, %s3759_s19  ;;  %s3776_s13 = sld [smem:[#allocation39_spill]] }
 0x127   : > { %p253_p2 = scmp.eq.s32.totalorder %s252_s10, 0  ;;  %p3777_p1 = scmp.ne.s32.totalorder %s3769_s16, 0 }
 0x128   : > { %p3779_p13 = scmp.lt.s32.totalorder %s2681_s29, 15  ;;  %s475_s11 = scalar_lea.vmem [#allocation17], %s1688_s26 }
 0x129   : > { %s2005_s20 = scalar_select %p3777_p1, [#allocation5], [#allocation24] }
 0x12a   : > { %s3857_s19 = smov (!%p253_p2, %s3759_s19), %s255_s15  ;;  %p3780_p7 = pmov %p3779_p13 }
 0x12b   : > { %3778 = sst [smem:[#allocation57_spill]] %s3857_s19  ;;  %s3859_s20 = smov (!%p3779_p13, %s2005_s20), [#allocation30] }
 0x12c   : > { %s2006_s1 = scalar_select %p3777_p1, %s2681_s29, 0 }
 0x12d   : > { %s483_s24 = sshll.u32 %s475_s11, 4  ;;  %p3781_p6 = pmov %p3780_p7  ;;  %s3273_s24 = int_to_ptr.vmem [resolvable:$true] %s483_s24 }
 0x12e   : > { %s3861_s1 = smov (!%p3780_p7, %s2006_s1), 0  ;;  %s3276_s14 = sld [smem:[#allocation5 + %s2681_s29]] }
 0x12f   : > { %p3269_p11 = pnand %p3781_p6, %p3777_p1  ;;  %s476_s5 = sld [smem:[%s3859_s20 + %s3861_s1]] }
 0x130   : > { %s3279_s7 = sld [smem:[#allocation5 + %s2901_s4]]  ;;  %p290_p10 = scmp.ne.s32.totalorder %s3775_s25, %s3774_s22 }
 0x131   : > { %s3783_s15 = sld [smem:[#allocation66_spill]]  ;;  %p3784_p4 = scmp.eq.s32.totalorder %s2681_s29, 0 }
 0x132   : > { %p2451_p3 = pneg %p3269_p11 }
 0x133   : > { %p3292_p0 = por %p290_p10, %p3784_p4 }
 0x135   : > { %s1782_s12 = sshll.u32 %s476_s5, 10 }
 0x136   : > { %s3785_s20 = scalar_select %p3292_p0, 1, 0 }
 0x137   : > { %s3288_s16 = scalar_lea.hbm %s3783_s15, %s1782_s12  ;;  %s2454_s10 = scalar_lea.hbm %s3783_s15, 7168 }
 0x138   : > { %s2449_s1 = scalar_lea.hbm %s3288_s16, 1024  ;;  %p2455_p1 = scmp.lt.s32.totalorder %s3288_s16, %s3783_s15 }
 0x139   : > { %p2450_p12 = scmp.ne.s32.totalorder %s3288_s16, %s2449_s1  ;;  %p2456_p13 = scmp.lt.s32.totalorder %s2454_s10, %s2449_s1 }
 0x13b   : > { %p2452_p9 = pnand %p2451_p3, %p2450_p12  ;;  %p2457_p7 = por %p2456_p13, %p2455_p1 }
 0x13d   : > { %p2453_p2 = pneg %p2452_p9 }
 0x13f   : > { %p2458_p6 = pnand %p2457_p7, %p2453_p2 }
 0x141   : > { %2461 = shalt.err (!%p2458_p6)
}
 0x142   : > { %s2462_s8 = scalar_lea.vmem %s3273_s24, 1024  ;;  %s2695_s19 = smov [#allocation17]  }
 0x143   : > { %p2463_p10 = scmp.ne.s32.totalorder %s3273_s24, %s2462_s8  ;;  %s2467_s4 = sshll.u32 %s2695_s19, 4  ;;  %s2468_s4 = int_to_ptr.vmem [resolvable:$false] %s2467_s4 }
 0x144   : > { %s2469_s11 = scalar_lea.vmem %s2468_s4, 2048  ;;  %p2470_p9 = scmp.lt.s32.totalorder %s3273_s24, %s2468_s4 }
 0x145   : > { %p2465_p4 = pnand %p2463_p10, %p2451_p3  ;;  %p2471_p5 = scmp.lt.s32.totalorder %s2469_s11, %s2462_s8 }
 0x147   : > { %p2466_p12 = pneg %p2465_p4  ;;  %p2472_p8 = por %p2471_p5, %p2470_p9 }
 0x149   : > { %p2473_p0 = pnand %p2472_p8, %p2466_p12 }
 0x14b   : > { %2476 = shalt.err (!%p2473_p0)
}
 0x14c   : > { %2042 = dma.hbm_to_vmem [thread:$0]  (!%p3269_p11), %s3288_s16, 1024, %s3273_s24, %s3056_s0, %s3743_s17, %s3743_s17, %s3742_s9  }
 0x14d   : > { %p3786_p8 = scmp.eq.s32.totalorder %s2898_s30, 0  ;;  %p3787_p5 = scmp.ne.s32.totalorder %s3774_s22, %s3776_s13 }
 0x14e   : > { %s493_s4 = sand.u32 1, %s3775_s25   ;;  %s280_s19 = ssub.s32 %s3276_s14, %s3279_s7 }
 0x14f   : > { %p3323_p0 = por %p3787_p5, %p3786_p8  ;;  %s283_s23 = sadd.s32 1, %s3775_s25 }
 0x150   : > { %p281_p3 = scmp.eq.s32.totalorder %s280_s19, 0  ;;  %s1691_s1 = sshll.u32 %s493_s4, 6 }
 0x151   : > { %s3788_s8 = scalar_select %p3323_p0, 1, 0 }
 0x152   : > { %p3789_p2 = scmp.ne.s32.totalorder %s3785_s20, 0  ;;  %s3863_s25 = smov (!%p281_p3, %s3775_s25), %s283_s23 }
 0x153   : > { %p3790_p1 = scmp.lt.s32.totalorder %s2681_s29, 15  ;;  %s497_s13 = scalar_lea.vmem [#allocation18], %s1691_s1 }
 0x154   : > { %s2008_s5 = scalar_select %p3789_p2, [#allocation5], [#allocation25] }
 0x155   : > { %s2009_s10 = scalar_select %p3789_p2, %s2681_s29, 0 }
 0x156   : > { %s3865_s5 = smov (!%p3790_p1, %s2008_s5), [#allocation31]  ;;  %p3791_p11 = pmov %p3790_p1 }
 0x157   : > { %p3792_p13 = pmov %p3790_p1  ;;  %s505_s24 = sshll.u32 %s497_s13, 4  ;;  %s3351_s24 = int_to_ptr.vmem [resolvable:$true] %s505_s24 }
 0x158   : > { %s3867_s10 = smov (!%p3791_p11, %s2009_s10), 0  ;;  %s3794_s12 = sld [smem:[#allocation67_spill]] }
 0x159   : > { %p3347_p7 = pnand %p3792_p13, %p3789_p2  ;;  %s498_s22 = sld [smem:[%s3865_s5 + %s3867_s10]] }
 0x15a   : > { %s3358_s29 = scalar_lea.sflag [#allocation19], %s493_s4 }
 0x15b   : > { %p2479_p10 = pneg %p3347_p7 }
 0x15e   : > { %s2482_s23 = scalar_lea.hbm %s3794_s12, 7168 }
 0x15f   : > { %s1783_s14 = sshll.u32 %s498_s22, 10 }
 0x160   : > { %s3356_s26 = scalar_lea.hbm %s3794_s12, %s1783_s14 }
 0x161   : > { %s2477_s20 = scalar_lea.hbm %s3356_s26, 1024  ;;  %p2483_p9 = scmp.lt.s32.totalorder %s3356_s26, %s3794_s12 }
 0x162   : > { %p2478_p6 = scmp.ne.s32.totalorder %s3356_s26, %s2477_s20  ;;  %p2484_p8 = scmp.lt.s32.totalorder %s2482_s23, %s2477_s20 }
 0x164   : > { %p2480_p4 = pnand %p2479_p10, %p2478_p6  ;;  %p2485_p5 = por %p2484_p8, %p2483_p9 }
 0x166   : > { %p2481_p12 = pneg %p2480_p4 }
 0x168   : > { %p2486_p3 = pnand %p2485_p5, %p2481_p12 }
 0x16a   : > { %2489 = shalt.err (!%p2486_p3)
}
 0x16b   : > { %s2490_s4 = scalar_lea.vmem %s3351_s24, 1024  ;;  %s2696_s10 = smov [#allocation18]  }
 0x16c   : > { %p2491_p2 = scmp.ne.s32.totalorder %s3351_s24, %s2490_s4  ;;  %s2495_s22 = sshll.u32 %s2696_s10, 4  ;;  %s2496_s22 = int_to_ptr.vmem [resolvable:$false] %s2495_s22 }
 0x16d   : > { %s2497_s13 = scalar_lea.vmem %s2496_s22, 2048  ;;  %p2498_p13 = scmp.lt.s32.totalorder %s3351_s24, %s2496_s22 }
 0x16e   : > { %p2493_p1 = pnand %p2491_p2, %p2479_p10  ;;  %p2499_p6 = scmp.lt.s32.totalorder %s2497_s13, %s2490_s4 }
 0x170   : > { %p2494_p11 = pneg %p2493_p1  ;;  %p2500_p4 = por %p2499_p6, %p2498_p13 }
 0x172   : > { %p2501_p0 = pnand %p2500_p4, %p2494_p11 }
 0x174   : > { %2504 = shalt.err (!%p2501_p0)
}
 0x175   : > { %2047 = dma.hbm_to_vmem [thread:$0]  (!%p3347_p7), %s3356_s26, 1024, %s3351_s24, %s3358_s29, %s3743_s17, %s3743_s17, %s3742_s9  }
 0x176   : > { %s3795_s14 = sld [smem:[#allocation52_spill]] }
 0x17c   : > { %p3796_p10 = scmp.ne.s32.totalorder %s3795_s14, 0 }
 0x17d   : > { %s527_s7 = sand.u32 (!%p3796_p10), 1, %s2673_s27   ;;  %p3797_p0 = scmp.ne.s32.totalorder (!%p3796_p10), %s3746_s6, 0 }
 0x17e   : > { %525 = sbr.rel (%p3796_p10) target bundleno = 1748 (0x6d4), region = 60  ;;  %s1695_s16 = sshll.u32 (!%p3796_p10), %s527_s7, 6 }
 0x17f   : > { %s528_s20 = scalar_lea.sflag (!%p3796_p10), [#allocation11], %s527_s7  ;;  %s3385_s11 = scalar_lea.vmem (!%p3796_p10), [#allocation10], %s1695_s16 }
 0x183   : > { %2584 = dma.done.wait (%p3797_p0), %s528_s20, 1024  }
 0x184   : > { %2586 = vsyncadd (%p3797_p0), %s528_s20, 4294966272  ;;  %s3798_s0 = sld [smem:[#allocation46_spill]]  ;;  %s536_s23 = sand.u32 1, %s2898_s30  }
 0x185   : > { %s3799_s19 = sld [smem:[#allocation50_spill]]  ;;  %s537_s24 = scalar_lea.sflag [#allocation13], %s536_s23 }
 0x18a   : > { %s538_s9 = sand.u32 1, %s3798_s0  }
 0x18b   : > { %s1696_s17 = sshll.u32 %s538_s9, 6  ;;  %p3800_p7 = scmp.ne.s32.totalorder %s3799_s19, 0 }
 0x18c   : > { %s3393_s26 = scalar_lea.vmem [#allocation12], %s1696_s17 }
 0x18d   : > { %2588 = dma.done.wait (%p3800_p7), %s537_s24, 1024  }
 0x18e   : > { %2590 = vsyncadd (%p3800_p7), %s537_s24, 4294966272  ;;  %s547_s29 = sand.u32 1, %s2649_s2   ;;  %p3801_p12 = scmp.ne.s32.totalorder %s3758_s28, 0 }
 0x18f   : > { %s1697_s1 = sshll.u32 %s547_s29, 6 }
 0x190   : > { %s3400_s6 = scalar_lea.vmem [#allocation14], %s1697_s1 }
 0x191   : > { %2592 = dma.done.wait (%p3801_p12), %s537_s24, 1024  }
 0x192   : > { %2594 = vsyncadd (%p3801_p12), %s537_s24, 4294966272  ;;  %s3802_s5 = sld [smem:[#allocation53_spill]]  ;;  %s556_s4 = sand.u32 1, %s2637_s21  }
 0x193   : > { %s1698_s10 = sshll.u32 %s556_s4, 6  ;;  %s555_s22 = scalar_lea.sflag [#allocation16], %s536_s23 }
 0x194   : > { %s3407_s13 = scalar_lea.vmem [#allocation15], %s1698_s10 }
 0x198   : > { %p3803_p9 = scmp.ne.s32.totalorder %s3802_s5, 0 }
 0x19a   : > { %2596 = dma.done.wait (%p3803_p9), %s555_s22, 1024  }
 0x19b   : > { %2598 = vsyncadd (%p3803_p9), %s555_s22, 4294966272  ;;  %s565_s14 = sand.u32 1, %s2625_s18   ;;  %p3804_p8 = scmp.ne.s32.totalorder %s3772_s3, 0 }
 0x19c   : > { %s1699_s7 = sshll.u32 %s565_s14, 6 }
 0x19d   : > { %s3414_s16 = scalar_lea.vmem [#allocation17], %s1699_s7 }
 0x19e   : > { %2600 = dma.done.wait (%p3804_p8), %s555_s22, 1024  }
 0x19f   : > { %2602 = vsyncadd (%p3804_p8), %s555_s22, 4294966272  ;;  %s3805_s28 = sld [smem:[#allocation40_spill]]  ;;  %p3806_p5 = scmp.ne.s32.totalorder %s3788_s8, 0 }
 0x1a5   : > { %s572_s20 = sand.u32 1, %s3805_s28  }
 0x1a6   : > { %s1700_s0 = sshll.u32 %s572_s20, 6  ;;  %s573_s19 = scalar_lea.sflag [#allocation19], %s572_s20 }
 0x1a7   : > { %s3421_s23 = scalar_lea.vmem [#allocation18], %s1700_s0 }
 0x1a8   : > { %2604 = dma.done.wait (%p3806_p5), %s573_s19, 1024  }
 0x1a9   : > { %2606 = vsyncadd (%p3806_p5), %s573_s19, 4294966272  ;;  %s645_s9 = sld [smem:[#allocation4 + %s2898_s30]]  ;;  %p1701_p1 = scmp.ne.s32.totalorder %s2898_s30, 0 }
 0x1aa   : > { %s652_s17 = sld [smem:[#allocation5 + %s2898_s30]] }
 0x1ab   : > { %s3807_s29 = sld [smem:[#allocation65_spill]] }
 0x1ac   : > { %s3808_s8 = sld [smem:[#allocation68_spill]] }
 0x1ad   : > { %s3809_s7 = sld [smem:[#allocation60_spill]] (!%p1701_p1) }
 0x1af   : > { %p646_p3 = scmp.lt.s32.totalorder %s645_s9, 7  ;;  %661 = sbr.rel (%p1701_p1) target bundleno = 438 (0x1b6), region = 88 }
 0x1b0   : > { %p653_p2 = scmp.lt.s32.totalorder %s652_s17, 6 }
 0x1b1   : > { %s3869_s9 = smov (!%p646_p3, %s645_s9), 7 }
 0x1b2   : > { %s3871_s17 = smov (!%p653_p2, %s652_s17), 6  ;;  %s648_s1 = scalar_lea.vmem %s3807_s29, %s3869_s9 }
 0x1b3   : > { %s655_s10 = scalar_lea.vmem %s3808_s8, %s3871_s17 }
 0x1b4   : > { %v662_v0 = vld [vmem:[%s3809_s7] sm:$0xff]  }
 0x1b5   : > { %664 = vst [vmem:[#allocation2] sm:$0xff] %v662_v0  }
 0x1b6 PF: > { %s3446_s28 = sld [smem:[#allocation6 + %s2898_s30]] }
 0x1b7   : > { %s3449_s20 = sld [smem:[#allocation9 + %s2898_s30]] }
 0x1bc   : > { %p1702_p11 = scmp.ne.s32.totalorder %s3446_s28, 1 }
 0x1bd   : > { %s674_s0 = sld [smem:[#allocation7 + %s2898_s30]] (!%p1702_p11) }
 0x1be   : > { %671 = sbr.rel (%p1702_p11) target bundleno = 1492 (0x5d4), region = 92  ;;  %s3810_s29 = sld [smem:[#allocation59_spill]] (!%p1702_p11) }
 0x1c3   : > { %v2213_v1 = vld [vmem:[%s3385_s11 + $0x38] sm:$0xff]   ;;  %v2697_v2 = vmov 0.0   ;;  %v2214_v3 = vld [vmem:[%s3385_s11 + $0x30] sm:$0xff]   ;;  %vm2698_vm0 = vmmov 0   ;;  %v2215_v4 = vld [vmem:[%s3385_s11 + $0x28] sm:$0xff]   ;;  %s1784_s19 = sshll.u32 %s674_s0, 3 }
 0x1c4   : > { %1861 = vmatprep.subr.bf16.mxu0 %v2697_v2  ;;  %1881 = vmatprep.subr.bf16.mxu1 %v2697_v2  ;;  %v2216_v5 = vld [vmem:[%s3385_s11 + $0x20] sm:$0xff]   ;;  %s677_s3 = scalar_lea.vmem [#allocation2], %s1784_s19  ;;  %v2217_v6 = vld [vmem:[%s3385_s11 + $0x18] sm:$0xff]   ;;  %v2218_v7 = vld [vmem:[%s3385_s11 + $0x10] sm:$0xff]   ;;  %vm797_vm1 = vcmask 130048  }
 0x1c5   : > { %1862 = vmatpush3.bf16.msra.mxu0 %v2213_v1  ;;  %1877 = vmatprep.mubr.msk.bf16.mxu0 %vm2698_vm0, %v2697_v2  ;;  %v2219_v8 = vld [vmem:[%s3385_s11 + $0x8] sm:$0xff]   ;;  %v2220_v9 = vld [vmem:[%s3385_s11] sm:$0xff]   ;;  %v2223_v17 = vld [vmem:[%s3393_s26 + $0x38] sm:$0xff]  }
 0x1c6   : > { %1863 = vmatprep.subr.bf16.mxu0 %v2697_v2  ;;  %1883 = vmatprep.mubr.msk.bf16.mxu1 %vm2698_vm0, %v2697_v2  ;;  %v2221_v10 = vld [vmem:[%s677_s3] sm:$0xff]   ;;  %v2224_v18 = vld [vmem:[%s3393_s26 + $0x30] sm:$0xff]   ;;  %v2225_v19 = vld [vmem:[%s3393_s26 + $0x28] sm:$0xff]  }
 0x1c7   : > { %v3480_v16 = vld [vmem:[%s3810_s29] sm:$0xff]   ;;  %v2227_v21 = vld [vmem:[%s3393_s26 + $0x18] sm:$0xff]   ;;  %v2228_v22 = vld [vmem:[%s3393_s26 + $0x10] sm:$0xff]  }
 0x1c8   : > { %v2226_v20 = vld [vmem:[%s3393_s26 + $0x20] sm:$0xff]   ;;  %v2229_v23 = vld [vmem:[%s3393_s26 + $0x8] sm:$0xff]   ;;  %v2239_v30 = vld [vmem:[%s3407_s13 + $0x38] sm:$0xff]  }
 0x1c9   : > { %1864 = vmatpush3.bf16.msra.mxu0 %v2214_v3  ;;  %v2230_v24 = vld [vmem:[%s3393_s26] sm:$0xff]   ;;  %v2240_v31 = vld [vmem:[%s3407_s13 + $0x30] sm:$0xff]   ;;  %v2241_v32 = vld [vmem:[%s3407_s13 + $0x28] sm:$0xff]  }
 0x1ca   : > { %1865 = vmatprep.subr.bf16.mxu0 %v2697_v2  ;;  %v2242_v33 = vld [vmem:[%s3407_s13 + $0x20] sm:$0xff]   ;;  %v2243_v34 = vld [vmem:[%s3407_s13 + $0x18] sm:$0xff]   ;;  %v2244_v35 = vld [vmem:[%s3407_s13 + $0x10] sm:$0xff]  }
 0x1cb   : > { %v2231_v41 = vld [vmem:[%s3400_s6 + $0x38] sm:$0xff]   ;;  %v2232_v42 = vld [vmem:[%s3400_s6 + $0x30] sm:$0xff]   ;;  %v2233_v43 = vld [vmem:[%s3400_s6 + $0x28] sm:$0xff]  }
 0x1cc   : > { %v2234_v44 = vld [vmem:[%s3400_s6 + $0x20] sm:$0xff]   ;;  %v2235_v45 = vld [vmem:[%s3400_s6 + $0x18] sm:$0xff]   ;;  %v2236_v46 = vld [vmem:[%s3400_s6 + $0x10] sm:$0xff]  }
 0x1cd   : > { %1866 = vmatpush3.bf16.msra.mxu0 %v2215_v4  ;;  %v2237_v47 = vld [vmem:[%s3400_s6 + $0x8] sm:$0xff]   ;;  %v2238_v48 = vld [vmem:[%s3400_s6] sm:$0xff]  }
 0x1ce   : > { %1867 = vmatprep.subr.bf16.mxu0 %v2697_v2  ;;  %v2245_v49 = vld [vmem:[%s3407_s13 + $0x8] sm:$0xff]   ;;  %v2246_v50 = vld [vmem:[%s3407_s13] sm:$0xff]   ;;  %s1787_s13 = sshll.u32 %s3449_s20, 3 }
 0x1cf   : > { %v1741_v62 = vld [vmem:[%s648_s1] ss:$0 sm:$0xff]  ;;  %s1222_s4 = scalar_lea.vmem [#allocation2], %s1787_s13 }
 0x1d1   : > { %1868 = vmatpush3.bf16.msra.mxu0 %v2216_v5 }
 0x1d2   : > { %1869 = vmatprep.subr.bf16.mxu0 %v2697_v2 }
 0x1d5   : > { %1870 = vmatpush3.bf16.msra.mxu0 %v2217_v6 }
 0x1d6   : > { %1871 = vmatprep.subr.bf16.mxu0 %v2697_v2 }
 0x1d9   : > { %1872 = vmatpush3.bf16.msra.mxu0 %v2218_v7 }
 0x1da   : > { %1873 = vmatprep.subr.bf16.mxu0 %v2697_v2 }
 0x1dd   : > { %1874 = vmatpush3.bf16.msra.mxu0 %v2219_v8 }
 0x1de   : > { %1875 = vmatprep.subr.bf16.mxu0 %v2697_v2 }
 0x1e1   : > { %1876 = vmatpush3.bf16.msra.mxu0 %v2220_v9 }
 0x1e2   : > { %1907 = vmatprep.subr.bf16.mxu0 %v2697_v2 }
 0x1e4   : > { %1878 = vmatmul.mubr.bf16.vlgmr.msra.gmra.mxu0 %v2221_v10 }
 0x1e5   : > { %1909 = vmatprep.mubr.msk.bf16.mxu0 %vm2698_vm0, %v2697_v2 }
 0x2a4   : > { %v784_v11 = vpop.f32.mrf.mxu0 }
 0x2a6   : > { %v1879_v12 = vpop.f32.mrf.mxu0 }
 0x2a8   : > { %v787_v13 = vpop.f32.mrf.mxu0 }
 0x2a9   : > { %v791_v14 = vpack.c.bf16 %v787_v13, %v784_v11 }
 0x2aa   : > { %v1880_v15 = vpop.f32.mrf.mxu0 }
 0x2ab   : > { %1882 = vmatpush3.bf16.msra.mxu1 %v791_v14 }
 0x2ac   : > { %1887 = vmatprep.subr.bf16.mxu1 %v2697_v2 }
 0x2ae   : > { %1884 = vmatmul.mubr.msk.bf16.vlgmr.msra.gmra.mxu1 %vm797_vm1, %v3480_v16 }
 0x2af   : > { %1888 = vmatpush3.bf16.msra.mxu1 %v2223_v17  ;;  %1903 = vmatprep.mubr.msk.bf16.mxu1 %vm2698_vm0, %v2697_v2 }
 0x2b0   : > { %1889 = vmatprep.subr.bf16.mxu1 %v2697_v2 }
 0x2b3   : > { %1890 = vmatpush3.bf16.msra.mxu1 %v2224_v18 }
 0x2b4   : > { %1891 = vmatprep.subr.bf16.mxu1 %v2697_v2 }
 0x2b7   : > { %1892 = vmatpush3.bf16.msra.mxu1 %v2225_v19 }
 0x2b8   : > { %1893 = vmatprep.subr.bf16.mxu1 %v2697_v2 }
 0x2bb   : > { %1894 = vmatpush3.bf16.msra.mxu1 %v2226_v20 }
 0x2bc   : > { %1895 = vmatprep.subr.bf16.mxu1 %v2697_v2 }
 0x2bf   : > { %1896 = vmatpush3.bf16.msra.mxu1 %v2227_v21 }
 0x2c0   : > { %1897 = vmatprep.subr.bf16.mxu1 %v2697_v2 }
 0x2c3   : > { %1898 = vmatpush3.bf16.msra.mxu1 %v2228_v22 }
 0x2c4   : > { %1899 = vmatprep.subr.bf16.mxu1 %v2697_v2 }
 0x2c7   : > { %1900 = vmatpush3.bf16.msra.mxu1 %v2229_v23 }
 0x2c8   : > { %1901 = vmatprep.subr.bf16.mxu1 %v2697_v2 }
 0x2cb   : > { %1902 = vmatpush3.bf16.msra.mxu1 %v2230_v24 }
 0x2cc   : > { %1913 = vmatprep.subr.bf16.mxu1 %v2697_v2 }
 0x36e   : > { %v835_v25 = vpop.f32.mrf.mxu1 }
 0x370   : > { %v1885_v26 = vpop.f32.mrf.mxu1 }
 0x372   : > { %v838_v27 = vpop.f32.mrf.mxu1 }
 0x373   : > { %v842_v28 = vpack.c.bf16 %v838_v27, %v835_v25 }
 0x374   : > { %v1886_v29 = vpop.f32.mrf.mxu1 }
 0x375   : > { %1904 = vmatmul.mubr.bf16.vlgmr.msra.gmra.mxu1 %v842_v28 }
 0x376   : > { %1929 = vmatprep.mubr.msk.bf16.mxu1 %vm2698_vm0, %v2697_v2  ;;  %1914 = vmatpush3.bf16.msra.mxu1 %v2239_v30 }
 0x377   : > { %1915 = vmatprep.subr.bf16.mxu1 %v2697_v2 }
 0x37a   : > { %1916 = vmatpush3.bf16.msra.mxu1 %v2240_v31 }
 0x37b   : > { %1917 = vmatprep.subr.bf16.mxu1 %v2697_v2 }
 0x37e   : > { %1918 = vmatpush3.bf16.msra.mxu1 %v2241_v32 }
 0x37f   : > { %1919 = vmatprep.subr.bf16.mxu1 %v2697_v2 }
 0x382   : > { %1920 = vmatpush3.bf16.msra.mxu1 %v2242_v33 }
 0x383   : > { %1921 = vmatprep.subr.bf16.mxu1 %v2697_v2 }
 0x386   : > { %1922 = vmatpush3.bf16.msra.mxu1 %v2243_v34 }
 0x387   : > { %1923 = vmatprep.subr.bf16.mxu1 %v2697_v2 }
 0x38a   : > { %1924 = vmatpush3.bf16.msra.mxu1 %v2244_v35 }
 0x38b   : > { %1925 = vmatprep.subr.bf16.mxu1 %v2697_v2 }
 0x38e   : > { %1926 = vmatpush3.bf16.msra.mxu1 %v2245_v49 }
 0x38f   : > { %1927 = vmatprep.subr.bf16.mxu1 %v2697_v2 }
 0x392   : > { %1928 = vmatpush3.bf16.msra.mxu1 %v2246_v50 }
 0x435   : > { %v941_v36 = vpop.f32.mrf.mxu1 }
 0x437   : > { %v1905_v37 = vpop.f32.mrf.mxu1 }
 0x439   : > { %v944_v38 = vpop.f32.mrf.mxu1 }
 0x43a   : > { %v948_v39 = vpack.c.bf16 %v944_v38, %v941_v36 }
 0x43b   : > { %v1906_v40 = vpop.f32.mrf.mxu1 }
 0x43c   : > { %1908 = vmatpush3.bf16.msra.mxu0 %v948_v39 }
 0x43d   : > { %1933 = vmatprep.subr.bf16.mxu0 %v2697_v2 }
 0x43f   : > { %1910 = vmatmul.mubr.msk.bf16.vlgmr.msra.gmra.mxu0 %vm797_vm1, %v3480_v16 }
 0x440   : > { %1934 = vmatpush3.bf16.msra.mxu0 %v2231_v41  ;;  %1949 = vmatprep.mubr.msk.bf16.mxu0 %vm2698_vm0, %v2697_v2 }
 0x441   : > { %1935 = vmatprep.subr.bf16.mxu0 %v2697_v2 }
 0x444   : > { %1936 = vmatpush3.bf16.msra.mxu0 %v2232_v42 }
 0x445   : > { %1937 = vmatprep.subr.bf16.mxu0 %v2697_v2 }
 0x448   : > { %1938 = vmatpush3.bf16.msra.mxu0 %v2233_v43 }
 0x449   : > { %1939 = vmatprep.subr.bf16.mxu0 %v2697_v2 }
 0x44c   : > { %1940 = vmatpush3.bf16.msra.mxu0 %v2234_v44 }
 0x44d   : > { %1941 = vmatprep.subr.bf16.mxu0 %v2697_v2 }
 0x450   : > { %1942 = vmatpush3.bf16.msra.mxu0 %v2235_v45 }
 0x451   : > { %1943 = vmatprep.subr.bf16.mxu0 %v2697_v2 }
 0x454   : > { %1944 = vmatpush3.bf16.msra.mxu0 %v2236_v46 }
 0x455   : > { %1945 = vmatprep.subr.bf16.mxu0 %v2697_v2 }
 0x458   : > { %1946 = vmatpush3.bf16.msra.mxu0 %v2237_v47 }
 0x459   : > { %1947 = vmatprep.subr.bf16.mxu0 %v2697_v2 }
 0x45c   : > { %1948 = vmatpush3.bf16.msra.mxu0 %v2238_v48 }
 0x45f   : > { %1950 = vmatmul.mubr.bf16.vlgmr.msra.gmra.mxu0 %v842_v28 }
 0x4ff   : > { %v983_v51 = vpop.f32.mrf.mxu0 }
 0x501   : > { %v1911_v52 = vpop.f32.mrf.mxu0 }
 0x503   : > { %v986_v53 = vpop.f32.mrf.mxu0 }
 0x504   : > { %v990_v54 = vpack.c.bf16 %v986_v53, %v983_v51 }
 0x505   : > { %v1912_v55 = vpop.f32.mrf.mxu0 }
 0x506   : > { %1930 = vmatmul.mubr.bf16.vlgmr.msra.gmra.mxu1 %v990_v54 }
 0x51f   : > { %v1194_v56 = vpop.f32.mrf.mxu0 }
 0x521   : > { %v1951_v57 = vpop.f32.mrf.mxu0 }
 0x523   : > { %v1197_v58 = vpop.f32.mrf.mxu0 }
 0x525   : > { %v1952_v59 = vpop.f32.mrf.mxu0 }
 0x5c6   : > { %v1105_v60 = vpop.f32.mrf.mxu1 }
 0x5c7   : > { %v1195_v61 = vadd.f32 %v1194_v56, %v1105_v60 }
 0x5c8   : > { %v1931_v63 = vpop.f32.mrf.mxu1 }
 0x5c9   : > { %v1208_v1 = vadd.f32 %v1741_v62, %v1195_v61 }
 0x5ca   : > { %v1108_v0 = vpop.f32.mrf.mxu1 }
 0x5cb   : > { %v1198_v2 = vadd.f32 %v1197_v58, %v1108_v0  ;;  %v1210_v5 = vmax.f32 %v1208_v1, 0.0 }
 0x5cc   : > { %v1932_v3 = vpop.f32.mrf.mxu1 }
 0x5cd   : > { %v1209_v4 = vadd.f32 %v1741_v62, %v1198_v2 }
 0x5cf   : > { %v1211_v6 = vmax.f32 %v1209_v4, 0.0 }
 0x5d1   : > { %v1796_v7 = vpack.c.bf16 %v1211_v6, %v1210_v5 }
 0x5d3   : > { %1797 = vst [vmem:[%s1222_s4] sm:$0xff] %v1796_v7  }
 0x5d4 PF: > { %p1746_p13 = scmp.ne.s32.totalorder %s3446_s28, 0 }
 0x5d5   : > { %s1235_s9 = sld [smem:[#allocation8 + %s2898_s30]] (!%p1746_p13)  ;;  %p1770_p6 = scmp.eq.s32.totalorder (!%p1746_p13), %s2898_s30, 14 }
 0x5d6   : > { %1228 = sbr.rel (%p1746_p13) target bundleno = 1748 (0x6d4), region = 96  ;;  %s1229_s1 = sld [smem:[#allocation7 + %s2898_s30]] (!%p1746_p13) }
 0x5db   : > { %v2247_v8 = vld [vmem:[%s3421_s23 + $0x38] sm:$0xff]   ;;  %v2699_v9 = vmov 0.0   ;;  %v2249_v11 = vld [vmem:[%s3421_s23 + $0x30] sm:$0xff]   ;;  %vm2700_vm2 = vmmov 0   ;;  %v2251_v13 = vld [vmem:[%s3421_s23 + $0x28] sm:$0xff]   ;;  %s1789_s8 = sshll.u32 %s1235_s9, 3 }
 0x5dc   : > { %1953 = vmatprep.subr.bf16.mxu0 %v2699_v9  ;;  %1973 = vmatprep.subr.bf16.mxu1 %v2699_v9  ;;  %v2248_v10 = vld [vmem:[%s3414_s16 + $0x38] sm:$0xff]   ;;  %v2250_v12 = vld [vmem:[%s3414_s16 + $0x30] sm:$0xff]   ;;  %v2252_v14 = vld [vmem:[%s3414_s16 + $0x28] sm:$0xff]   ;;  %s1788_s22 = sshll.u32 %s1229_s1, 3  ;;  %s1238_s14 = scalar_lea.vmem [#allocation2], %s1789_s8 }
 0x5dd   : > { %1954 = vmatpush3.bf16.msra.mxu0 %v2247_v8  ;;  %1969 = vmatprep.mubr.msk.bf16.mxu0 %vm2700_vm2, %v2699_v9  ;;  %v2253_v15 = vld [vmem:[%s3421_s23 + $0x20] sm:$0xff]   ;;  %v2255_v17 = vld [vmem:[%s3421_s23 + $0x18] sm:$0xff]   ;;  %s1232_s7 = scalar_lea.vmem [#allocation2], %s1788_s22  ;;  %v2257_v19 = vld [vmem:[%s3421_s23 + $0x10] sm:$0xff]  }
 0x5de   : > { %1974 = vmatpush3.bf16.msra.mxu1 %v2248_v10  ;;  %1955 = vmatprep.subr.bf16.mxu0 %v2699_v9  ;;  %v2254_v16 = vld [vmem:[%s3414_s16 + $0x20] sm:$0xff]   ;;  %v2256_v18 = vld [vmem:[%s3414_s16 + $0x18] sm:$0xff]   ;;  %v2258_v20 = vld [vmem:[%s3414_s16 + $0x10] sm:$0xff]  }
 0x5df   : > { %1975 = vmatprep.subr.bf16.mxu1 %v2699_v9  ;;  %1989 = vmatprep.mubr.msk.bf16.mxu1 %vm2700_vm2, %v2699_v9  ;;  %v2259_v21 = vld [vmem:[%s3421_s23 + $0x8] sm:$0xff]   ;;  %v2261_v23 = vld [vmem:[%s3421_s23] sm:$0xff]  }
 0x5e0   : > { %v2260_v22 = vld [vmem:[%s3414_s16 + $0x8] sm:$0xff]   ;;  %v2262_v24 = vld [vmem:[%s3414_s16] sm:$0xff]   ;;  %s1792_s16 = sshll.u32 (!%p1770_p6), %s3449_s20, 3 }
 0x5e1   : > { %1956 = vmatpush3.bf16.msra.mxu0 %v2249_v11  ;;  %v2263_v25 = vld [vmem:[%s1238_s14] sm:$0xff]   ;;  %s1488_s23 = scalar_lea.vmem (!%p1770_p6), [#allocation2], %s1792_s16 }
 0x5e2   : > { %1976 = vmatpush3.bf16.msra.mxu1 %v2250_v12  ;;  %1957 = vmatprep.subr.bf16.mxu0 %v2699_v9  ;;  %v2264_v26 = vld [vmem:[%s1232_s7] sm:$0xff]  }
 0x5e3   : > { %1977 = vmatprep.subr.bf16.mxu1 %v2699_v9  ;;  %v1769_v29 = vld [vmem:[%s655_s10] ss:$0 sm:$0xff] }
 0x5e5   : > { %1958 = vmatpush3.bf16.msra.mxu0 %v2251_v13 }
 0x5e6   : > { %1978 = vmatpush3.bf16.msra.mxu1 %v2252_v14  ;;  %1959 = vmatprep.subr.bf16.mxu0 %v2699_v9 }
 0x5e7   : > { %1979 = vmatprep.subr.bf16.mxu1 %v2699_v9 }
 0x5e9   : > { %1960 = vmatpush3.bf16.msra.mxu0 %v2253_v15 }
 0x5ea   : > { %1980 = vmatpush3.bf16.msra.mxu1 %v2254_v16  ;;  %1961 = vmatprep.subr.bf16.mxu0 %v2699_v9 }
 0x5eb   : > { %1981 = vmatprep.subr.bf16.mxu1 %v2699_v9 }
 0x5ed   : > { %1962 = vmatpush3.bf16.msra.mxu0 %v2255_v17 }
 0x5ee   : > { %1982 = vmatpush3.bf16.msra.mxu1 %v2256_v18  ;;  %1963 = vmatprep.subr.bf16.mxu0 %v2699_v9 }
 0x5ef   : > { %1983 = vmatprep.subr.bf16.mxu1 %v2699_v9 }
 0x5f1   : > { %1964 = vmatpush3.bf16.msra.mxu0 %v2257_v19 }
 0x5f2   : > { %1984 = vmatpush3.bf16.msra.mxu1 %v2258_v20  ;;  %1965 = vmatprep.subr.bf16.mxu0 %v2699_v9 }
 0x5f3   : > { %1985 = vmatprep.subr.bf16.mxu1 %v2699_v9 }
 0x5f5   : > { %1966 = vmatpush3.bf16.msra.mxu0 %v2259_v21 }
 0x5f6   : > { %1986 = vmatpush3.bf16.msra.mxu1 %v2260_v22  ;;  %1967 = vmatprep.subr.bf16.mxu0 %v2699_v9 }
 0x5f7   : > { %1987 = vmatprep.subr.bf16.mxu1 %v2699_v9 }
 0x5f9   : > { %1968 = vmatpush3.bf16.msra.mxu0 %v2261_v23 }
 0x5fa   : > { %1988 = vmatpush3.bf16.msra.mxu1 %v2262_v24 }
 0x5fc   : > { %1970 = vmatmul.mubr.bf16.vlgmr.msra.gmra.mxu0 %v2263_v25 }
 0x5fd   : > { %1990 = vmatmul.mubr.bf16.vlgmr.msra.gmra.mxu1 %v2264_v26 }
 0x6bc   : > { %v1361_v27 = vpop.f32.mrf.mxu0 }
 0x6bd   : > { %v1456_v28 = vpop.f32.mrf.mxu1 }
 0x6be   : > { %v1457_v30 = vadd.f32 %v1456_v28, %v1361_v27  ;;  %v1971_v31 = vpop.f32.mrf.mxu0 }
 0x6bf   : > { %v1991_v32 = vpop.f32.mrf.mxu1 }
 0x6c0   : > { %v1470_v33 = vadd.f32 %v1769_v29, %v1457_v30  ;;  %v1364_v34 = vpop.f32.mrf.mxu0 }
 0x6c1   : > { %v1459_v35 = vpop.f32.mrf.mxu1 }
 0x6c2   : > { %v1472_v36 = vmax.f32 %v1470_v33, 0.0  ;;  %v1460_v37 = vadd.f32 %v1459_v35, %v1364_v34  ;;  %v1972_v38 = vpop.f32.mrf.mxu0  ;;  %1477 = sbr.rel (%p1770_p6) target bundleno = 1739 (0x6cb), region = 100 }
 0x6c3   : > { %v1992_v39 = vpop.f32.mrf.mxu1 }
 0x6c4   : > { %v1471_v40 = vadd.f32 %v1769_v29, %v1460_v37 }
 0x6c6   : > { %v1473_v41 = vmax.f32 %v1471_v40, 0.0 }
 0x6c8   : > { %v1801_v42 = vpack.c.bf16 %v1473_v41, %v1472_v36 }
 0x6ca   : > { %1802 = vst [vmem:[%s1488_s23] sm:$0xff] %v1801_v42  }
 0x6cb PF: > { %p1775_p4 = scmp.ne.s32.totalorder %s2898_s30, 14 }
 0x6cc   : > { %s3813_s3 = sld [smem:[#allocation69_spill]] (!%p1775_p4) }
 0x6cd   : > { %1494 = sbr.rel (%p1775_p4) target bundleno = 1748 (0x6d4), region = 104 }
 0x6d2   : > { %s3814_s11 = smov %s3813_s3  ;;  %1495 = vst [vmem:[%s3813_s3] sm:$0xff] %v1472_v36 }
 0x6d3   : > { %1496 = vst [vmem:[%s3814_s11 + $0x8] sm:$0xff] %v1473_v41 }
 0x6d4 PF: > { %s3815_s29 = sld [smem:[#allocation49_spill]]  ;;  %s3829_s0 = smov %s3863_s25 }
 0x6d5   : > { %s3816_s5 = sld [smem:[#allocation40_spill]]  ;;  %s3830_s17 = smov %s2625_s18 }
 0x6d6   : > { %s3817_s1 = sld [smem:[#allocation41_spill]]  ;;  %s3835_s22 = smov %s2649_s2 }
 0x6d7   : > { %s3818_s20 = sld [smem:[#allocation43_spill]] }
 0x6d8   : > { %s3819_s19 = sld [smem:[#allocation57_spill]] }
 0x6d9   : > { %s3820_s30 = sld [smem:[#allocation44_spill]] }
 0x6da   : > { %s3821_s6 = sld [smem:[#allocation54_spill]]  ;;  %p61_p10 = scmp.ge.s32.totalorder %s3815_s29, 17  }
 0x6db   : > { %s3822_s26 = sld [smem:[#allocation45_spill]] }
 0x6dc   : > { %s3823_s3 = sld [smem:[#allocation56_spill]] }
 0x6dd   : > { %s3824_s23 = sld [smem:[#allocation46_spill]]  ;;  %s3832_s18 = smov %s3818_s20 }
 0x6de   : > { %s3825_s24 = sld [smem:[#allocation47_spill]]  ;;  %s3833_s20 = smov %s2637_s21 }
 0x6df   : > { %s3826_s13 = sld [smem:[#allocation51_spill]]  ;;  %s3834_s21 = smov %s3820_s30 }
 0x6e0   : > { %s3827_s4 = sld [smem:[#allocation48_spill]] }
 0x6e1   : > { %s3828_s28 = sld [smem:[#allocation55_spill]]  ;;  %s3836_s2 = smov %s3822_s26 }
 0x6e2   : > { %s3838_s26 = smov %s2673_s27  ;;  %63 = sbr.rel (!%p61_p10) target bundleno = 102 (0x66), region = 188 }
 0x6e5   : > { %s3837_s25 = smov %s3826_s13 }
 0x6e6   : > { %s3839_s27 = smov %s3827_s4 }
 0x6e7   :  { %1508 = vsyncpa [#allocation11], 1 }
 0x6e8   :  { %1510 = vsyncpa [#allocation11 + $0x1], 1 }
 0x6e9   :  { %1511 = vsyncpa [#allocation13], 1 }
 0x6ea   :  { %1513 = vsyncpa [#allocation13 + $0x1], 1 }
 0x6eb   :  { %1514 = vsyncpa [#allocation16], 1 }
 0x6ec   :  { %1516 = vsyncpa [#allocation16 + $0x1], 1 }
 0x6ed   :  { %1517 = vsyncpa [#allocation19], 1 }
 0x6ee   :  { %1519 = vsyncpa [#allocation19 + $0x1], 1 }

</bundles_post_ra>
